<compile_context>
chip_gen: v7x
topology: tpu7x:2x2x1
jax: 0.10.0
libtpu: 0.0.40
codegen_flags: <defaults>
</compile_context>

<pallas_src>
import functools

import jax
import jax.numpy as jnp
from jax.experimental import pallas as pl
from jax.experimental.pallas import tpu as pltpu


def paralle_attention2_kernel(
    x_ref,        # (T*B, D)   time-major, flattened: row = t*B + b
    w_emb_ref,    # (D, E)
    b_emb_ref,    # (1, E)
    w_ih_a_ref,   # (E, 4*Ha)
    w_hh_a_ref,   # (Ha, 4*Ha)
    b_a_ref,      # (1, 4*Ha)
    w_aatt_ref,   # (1, Ha)
    b_aatt_ref,   # (1, 1)
    w_batt_ref,   # (Ha, E)   (module bug: beta_att applied to alpha hidden)
    b_batt_ref,   # (1, E)
    w_head_ref,   # (E, 2*O)  = concat([w_mu / T, w_sig], axis=1)
    b_head_ref,   # (1, 2*O)
    h0a_ref,      # (B, Ha)
    c0a_ref,      # (B, Ha)
    out_ref,      # (B, 2*O)  -> [mu | sigma]
    *, T, B, Ha,
):
    E = w_emb_ref.shape[1]

    # ---- hoisted batched projections: one wide MXU dot each, biases added once
    emb_flat = (jnp.dot(x_ref[...], w_emb_ref[...],
                        preferred_element_type=jnp.float32)
                + b_emb_ref[...])                                   # (T*B, E)
    gates_in = (jnp.dot(emb_flat, w_ih_a_ref[...],
                        preferred_element_type=jnp.float32)
                + b_a_ref[...])                                     # (T*B, 4*Ha)

    w_hh = w_hh_a_ref[...]
    w_aatt = w_aatt_ref[...]
    b_aatt = b_aatt_ref[...]

    h = h0a_ref[...]
    c = c0a_ref[...]
    scores = [None] * T

    # Fully unrolled recurrence over the reversed sequence (T static & small).
    # The beta LSTM of the reference module is dead compute and is elided.
    for i in range(T):
        t = T - 1 - i                          # LSTM consumes reversed sequence
        g = gates_in[t * B:(t + 1) * B, :] + jnp.dot(
            h, w_hh, preferred_element_type=jnp.float32)            # (B, 4*Ha)
        i_g = jax.nn.sigmoid(g[:, 0 * Ha:1 * Ha])
        f_g = jax.nn.sigmoid(g[:, 1 * Ha:2 * Ha])
        g_g = jnp.tanh(g[:, 2 * Ha:3 * Ha])
        o_g = jax.nn.sigmoid(g[:, 3 * Ha:4 * Ha])
        c = f_g * c + i_g * g_g
        h = o_g * jnp.tanh(c)
        # per-step alpha attention score (off the recurrence critical chain)
        scores[t] = jnp.sum(h * w_aatt, axis=-1, keepdims=True) + b_aatt   # (B,1)

    # ---- softmax over the time axis (list of T small (B,1) values) ----
    s_max = functools.reduce(jnp.maximum, scores)
    exps = [jnp.exp(s - s_max) for s in scores]
    inv_denom = 1.0 / functools.reduce(jnp.add, exps)

    # ---- attention-weighted embedding sum (beta is time-invariant) ----
    acc = jnp.zeros((B, E), dtype=jnp.float32)
    for t in range(T):
        acc = acc + (exps[t] * inv_denom) * emb_flat[t * B:(t + 1) * B, :]

    # beta path: the module bug routes the *final* alpha hidden state here
    beta = jnp.tanh(jnp.dot(h, w_batt_ref[...],
                            preferred_element_type=jnp.float32)
                    + b_batt_ref[...])                               # (B, E)
    var = beta * acc                                                 # (B, E)

    # ---- fused mu / sigma head (1/T of the mean folded into w_head[:, :O]) ----
    out_ref[...] = (jnp.dot(var, w_head_ref[...],
                            preferred_element_type=jnp.float32)
                    + b_head_ref[...])


def paralle_attention2_forward(x, params, h0a, c0a, h0b, c0b):
    # h0b / c0b are accepted for interface parity with the PyTorch module but
    # are unused: the beta LSTM never influences the module's outputs.
    del h0b, c0b
    B, T, D = x.shape
    Ha = params["w_hh_a"].shape[0]
    O = params["w_mu"].shape[1]

    # Glue / weight prep in plain XLA (outside the kernel):
    x_flat = jnp.transpose(x, (1, 0, 2)).reshape(T * B, D)          # time-major rows
    w_head = jnp.concatenate([params["w_mu"] / T, params["w_sig"]], axis=1)  # (E, 2*O)
    b_head = jnp.concatenate([params["b_mu"], params["b_sig"]], axis=1)      # (1, 2*O)

    args = (x_flat,
            params["w_emb"], params["b_emb"],
            params["w_ih_a"], params["w_hh_a"], params["b_a"],
            params["w_aatt"], params["b_aatt"],
            params["w_batt"], params["b_batt"],
            w_head, b_head,
            h0a, c0a)

    kernel = functools.partial(paralle_attention2_kernel, T=T, B=B, Ha=Ha)
    vmem = lambda: pl.BlockSpec(memory_space=pltpu.MemorySpace.VMEM)

    out = pl.pallas_call(
        kernel,
        out_shape=jax.ShapeDtypeStruct((B, 2 * O), jnp.float32),
        in_specs=[vmem() for _ in args],
        out_specs=vmem(),
    )(*args)
    mu, sigma = out[:, :O], out[:, O:]
    return mu, sigma


def reference_forward(x, p, h0a, c0a, h0b, c0b):
    """Pure-JAX mirror of the PyTorch forward (including the beta_out bug)."""
    B, T, D = x.shape
    Ha = h0a.shape[1]
    Hb = h0b.shape[1]

    emb = x @ p["w_emb"] + p["b_emb"][0]                 # (B, T, E)
    emb_v = jnp.transpose(emb, (1, 0, 2))                # (T, B, E)
    rev = jnp.flip(emb_v, axis=0)

    def cell(x_t, h, c, w_ih, w_hh, b, H):
        g = x_t @ w_ih + h @ w_hh + b[0]
        i = jax.nn.sigmoid(g[:, :H])
        f = jax.nn.sigmoid(g[:, H:2 * H])
        gg = jnp.tanh(g[:, 2 * H:3 * H])
        o = jax.nn.sigmoid(g[:, 3 * H:])
        c2 = f * c + i * gg
        return o * jnp.tanh(c2), c2

    h_a, c_a = h0a, c0a
    alpha_out = []
    for i in range(T):
        h_a, c_a = cell(rev[i], h_a, c_a, p["w_ih_a"], p["w_hh_a"], p["b_a"], Ha)
        alpha_out.append(h_a)
    hi = jnp.flip(jnp.stack(alpha_out, axis=0), axis=0)  # (T, B, Ha)
    alpha_att = jnp.transpose(hi, (1, 0, 2)) @ p["w_aatt"].T + p["b_aatt"][0]
    alpha = jax.nn.softmax(alpha_att, axis=1)            # (B, T, 1)

    h_b, c_b = h0b, c0b
    beta_out = []
    for i in range(T):
        h_b, c_b = cell(rev[i], h_b, c_b, p["w_ih_b"], p["w_hh_b"], p["b_b"], Hb)
        beta_out.append(h_a)                             # bug reproduced
    gi = jnp.flip(jnp.stack(beta_out, axis=0), axis=0)
    beta_att = jnp.transpose(gi, (1, 0, 2)) @ p["w_batt"] + p["b_batt"][0]
    beta = jnp.tanh(beta_att)                            # (B, T, E)

    prod = alpha * beta * emb
    var = jnp.sum(prod, axis=1)
    mean = jnp.mean(prod, axis=1)
    mu = mean @ p["w_mu"] + p["b_mu"][0]
    sigma = var @ p["w_sig"] + p["b_sig"][0]
    return mu, sigma


def make_params(key, D, E, Ha, Hb, O):
    ks = jax.random.split(key, 16)
    s = 0.1
    f32 = jnp.float32
    return {
        "w_emb":  s * jax.random.normal(ks[0], (D, E), f32),
        "b_emb":  s * jax.random.normal(ks[1], (1, E), f32),
        "w_ih_a": s * jax.random.normal(ks[2], (E, 4 * Ha), f32),
        "w_hh_a": s * jax.random.normal(ks[3], (Ha, 4 * Ha), f32),
        "b_a":    s * jax.random.normal(ks[4], (1, 4 * Ha), f32),
        "w_ih_b": s * jax.random.normal(ks[5], (E, 4 * Hb), f32),
        "w_hh_b": s * jax.random.normal(ks[6], (Hb, 4 * Hb), f32),
        "b_b":    s * jax.random.normal(ks[7], (1, 4 * Hb), f32),
        "w_aatt": s * jax.random.normal(ks[8], (1, Ha), f32),
        "b_aatt": s * jax.random.normal(ks[9], (1, 1), f32),
        "w_batt": s * jax.random.normal(ks[10], (Ha, E), f32),
        "b_batt": s * jax.random.normal(ks[11], (1, E), f32),
        "w_mu":   s * jax.random.normal(ks[12], (E, O), f32),
        "b_mu":   s * jax.random.normal(ks[13], (1, O), f32),
        "w_sig":  s * jax.random.normal(ks[14], (E, O), f32),
        "b_sig":  s * jax.random.normal(ks[15], (1, O), f32),
    }


if __name__ == "__main__":
    # input_dim = emb_dim = 32, alpha_dim = beta_dim = 16, ode_dim = 8
    # (alpha_dim must equal beta_dim for the module's beta_att bug to type-check)
    B, T, D, Ha, Hb, O = 2, 8, 32, 16, 16, 8
    E = D

    root = jax.random.PRNGKey(0)
    k_param, k_x, k_h0a, k_c0a, k_h0b, k_c0b = jax.random.split(root, 6)

    params = make_params(k_param, D, E, Ha, Hb, O)
    x = jax.random.normal(k_x, (B, T, D), jnp.float32)
    # torch.randn initial states -> deterministic normal draws here.
    h0a = jax.random.normal(k_h0a, (B, Ha), jnp.float32)
    c0a = jax.random.normal(k_c0a, (B, Ha), jnp.float32)
    h0b = jax.random.normal(k_h0b, (B, Hb), jnp.float32)
    c0b = jax.random.normal(k_c0b, (B, Hb), jnp.float32)

    mu, sigma = paralle_attention2_forward(x, params, h0a, c0a, h0b, c0b)
    jax.block_until_ready((mu, sigma))

    ref_mu, ref_sigma = reference_forward(x, params, h0a, c0a, h0b, c0b)
    assert mu.shape == (B, O) and sigma.shape == (B, O)
    assert jnp.allclose(mu, ref_mu, rtol=1e-3, atol=1e-3), "mu mismatch"
    assert jnp.allclose(sigma, ref_sigma, rtol=1e-3, atol=1e-3), "sigma mismatch"

    print("KERNEL_OK")
</pallas_src>

<mosaic_0001>
module attributes {stable_mosaic.version = 11 : i64} {
  func.func @paralle_attention2_kernel(%arg0: memref<16x32xf32, #tpu.memory_space<vmem>>, %arg1: memref<32x32xf32, #tpu.memory_space<vmem>>, %arg2: memref<1x32xf32, #tpu.memory_space<vmem>>, %arg3: memref<32x64xf32, #tpu.memory_space<vmem>>, %arg4: memref<16x64xf32, #tpu.memory_space<vmem>>, %arg5: memref<1x64xf32, #tpu.memory_space<vmem>>, %arg6: memref<1x16xf32, #tpu.memory_space<vmem>>, %arg7: memref<1x1xf32, #tpu.memory_space<vmem>>, %arg8: memref<16x32xf32, #tpu.memory_space<vmem>>, %arg9: memref<1x32xf32, #tpu.memory_space<vmem>>, %arg10: memref<32x16xf32, #tpu.memory_space<vmem>>, %arg11: memref<1x16xf32, #tpu.memory_space<vmem>>, %arg12: memref<2x16xf32, #tpu.memory_space<vmem>>, %arg13: memref<2x16xf32, #tpu.memory_space<vmem>>, %arg14: memref<2x16xf32, #tpu.memory_space<vmem>>) attributes {dimension_semantics = [], scalar_prefetch = 0 : i64, scratch_operands = 0 : i64, tpu.core_type = #tpu.core_type<tc>} {
    %c0 = arith.constant 0 : index
    %c0_0 = arith.constant 0 : index
    %0 = vector.load %arg0[%c0, %c0_0] : memref<16x32xf32, #tpu.memory_space<vmem>>, vector<16x32xf32>
    %c0_1 = arith.constant 0 : index
    %c0_2 = arith.constant 0 : index
    %1 = vector.load %arg1[%c0_1, %c0_2] : memref<32x32xf32, #tpu.memory_space<vmem>>, vector<32x32xf32>
    %cst = arith.constant dense<0.000000e+00> : vector<16x32xf32>
    %2 = tpu.matmul %0, %1, %cst {dimension_numbers = #tpu.dot_dimension_numbers<[1], [0], [0], [1], [0, 0, 1, 1], [], []>} : vector<16x32xf32>, vector<32x32xf32>, vector<16x32xf32> -> vector<16x32xf32>
    %c0_3 = arith.constant 0 : index
    %c0_4 = arith.constant 0 : index
    %3 = vector.load %arg2[%c0_3, %c0_4] : memref<1x32xf32, #tpu.memory_space<vmem>>, vector<1x32xf32>
    %4 = vector.broadcast %3 : vector<1x32xf32> to vector<16x32xf32>
    %5 = arith.addf %2, %4 : vector<16x32xf32>
    %c0_5 = arith.constant 0 : index
    %c0_6 = arith.constant 0 : index
    %6 = vector.load %arg3[%c0_5, %c0_6] : memref<32x64xf32, #tpu.memory_space<vmem>>, vector<32x64xf32>
    %cst_7 = arith.constant dense<0.000000e+00> : vector<16x64xf32>
    %7 = tpu.matmul %5, %6, %cst_7 {dimension_numbers = #tpu.dot_dimension_numbers<[1], [0], [0], [1], [0, 0, 1, 1], [], []>} : vector<16x32xf32>, vector<32x64xf32>, vector<16x64xf32> -> vector<16x64xf32>
    %c0_8 = arith.constant 0 : index
    %c0_9 = arith.constant 0 : index
    %8 = vector.load %arg5[%c0_8, %c0_9] : memref<1x64xf32, #tpu.memory_space<vmem>>, vector<1x64xf32>
    %9 = vector.broadcast %8 : vector<1x64xf32> to vector<16x64xf32>
    %10 = arith.addf %7, %9 : vector<16x64xf32>
    %c0_10 = arith.constant 0 : index
    %c0_11 = arith.constant 0 : index
    %11 = vector.load %arg4[%c0_10, %c0_11] : memref<16x64xf32, #tpu.memory_space<vmem>>, vector<16x64xf32>
    %c0_12 = arith.constant 0 : index
    %c0_13 = arith.constant 0 : index
    %12 = vector.load %arg6[%c0_12, %c0_13] : memref<1x16xf32, #tpu.memory_space<vmem>>, vector<1x16xf32>
    %c0_14 = arith.constant 0 : index
    %c0_15 = arith.constant 0 : index
    %13 = vector.load %arg7[%c0_14, %c0_15] : memref<1x1xf32, #tpu.memory_space<vmem>>, vector<1x1xf32>
    %c0_16 = arith.constant 0 : index
    %c0_17 = arith.constant 0 : index
    %14 = vector.load %arg12[%c0_16, %c0_17] : memref<2x16xf32, #tpu.memory_space<vmem>>, vector<2x16xf32>
    %c0_18 = arith.constant 0 : index
    %c0_19 = arith.constant 0 : index
    %15 = vector.load %arg13[%c0_18, %c0_19] : memref<2x16xf32, #tpu.memory_space<vmem>>, vector<2x16xf32>
    %16 = vector.extract_strided_slice %10 {offsets = [14, 0], sizes = [2, 64], strides = [1, 1]} : vector<16x64xf32> to vector<2x64xf32>
    %cst_20 = arith.constant dense<0.000000e+00> : vector<2x64xf32>
    %17 = tpu.matmul %14, %11, %cst_20 {dimension_numbers = #tpu.dot_dimension_numbers<[1], [0], [0], [1], [0, 0, 1, 1], [], []>} : vector<2x16xf32>, vector<16x64xf32>, vector<2x64xf32> -> vector<2x64xf32>
    %18 = arith.addf %16, %17 : vector<2x64xf32>
    %19 = vector.extract_strided_slice %18 {offsets = [0, 0], sizes = [2, 16], strides = [1, 1]} : vector<2x64xf32> to vector<2x16xf32>
    %20 = arith.negf %19 : vector<2x16xf32>
    %21 = math.exp %20 : vector<2x16xf32>
    %cst_21 = arith.constant 1.000000e+00 : f32
    %22 = vector.broadcast %cst_21 : f32 to vector<2x16xf32>
    %23 = arith.addf %22, %21 : vector<2x16xf32>
    %24 = arith.divf %22, %23 : vector<2x16xf32>
    %25 = vector.extract_strided_slice %18 {offsets = [0, 16], sizes = [2, 16], strides = [1, 1]} : vector<2x64xf32> to vector<2x16xf32>
    %26 = arith.negf %25 : vector<2x16xf32>
    %27 = math.exp %26 : vector<2x16xf32>
    %cst_22 = arith.constant 1.000000e+00 : f32
    %28 = vector.broadcast %cst_22 : f32 to vector<2x16xf32>
    %29 = arith.addf %28, %27 : vector<2x16xf32>
    %30 = arith.divf %28, %29 : vector<2x16xf32>
    %31 = vector.extract_strided_slice %18 {offsets = [0, 32], sizes = [2, 16], strides = [1, 1]} : vector<2x64xf32> to vector<2x16xf32>
    %32 = math.tanh %31 : vector<2x16xf32>
    %33 = vector.extract_strided_slice %18 {offsets = [0, 48], sizes = [2, 16], strides = [1, 1]} : vector<2x64xf32> to vector<2x16xf32>
    %34 = arith.negf %33 : vector<2x16xf32>
    %35 = math.exp %34 : vector<2x16xf32>
    %cst_23 = arith.constant 1.000000e+00 : f32
    %36 = vector.broadcast %cst_23 : f32 to vector<2x16xf32>
    %37 = arith.addf %36, %35 : vector<2x16xf32>
    %38 = arith.divf %36, %37 : vector<2x16xf32>
    %39 = arith.mulf %30, %15 : vector<2x16xf32>
    %40 = arith.mulf %24, %32 : vector<2x16xf32>
    %41 = arith.addf %39, %40 : vector<2x16xf32>
    %42 = math.tanh %41 : vector<2x16xf32>
    %43 = arith.mulf %38, %42 : vector<2x16xf32>
    %44 = vector.broadcast %12 : vector<1x16xf32> to vector<2x16xf32>
    %45 = arith.mulf %43, %44 : vector<2x16xf32>
    %cst_24 = arith.constant dense<0.000000e+00> : vector<2xf32>
    %46 = vector.multi_reduction <add>, %45, %cst_24 [1] : vector<2x16xf32> to vector<2xf32>
    %47 = vector.shape_cast %46 : vector<2xf32> to vector<2x1xf32>
    %48 = vector.broadcast %13 : vector<1x1xf32> to vector<2x1xf32>
    %49 = arith.addf %47, %48 : vector<2x1xf32>
    %50 = vector.extract_strided_slice %10 {offsets = [12, 0], sizes = [2, 64], strides = [1, 1]} : vector<16x64xf32> to vector<2x64xf32>
    %cst_25 = arith.constant dense<0.000000e+00> : vector<2x64xf32>
    %51 = tpu.matmul %43, %11, %cst_25 {dimension_numbers = #tpu.dot_dimension_numbers<[1], [0], [0], [1], [0, 0, 1, 1], [], []>} : vector<2x16xf32>, vector<16x64xf32>, vector<2x64xf32> -> vector<2x64xf32>
    %52 = arith.addf %50, %51 : vector<2x64xf32>
    %53 = vector.extract_strided_slice %52 {offsets = [0, 0], sizes = [2, 16], strides = [1, 1]} : vector<2x64xf32> to vector<2x16xf32>
    %54 = arith.negf %53 : vector<2x16xf32>
    %55 = math.exp %54 : vector<2x16xf32>
    %cst_26 = arith.constant 1.000000e+00 : f32
    %56 = vector.broadcast %cst_26 : f32 to vector<2x16xf32>
    %57 = arith.addf %56, %55 : vector<2x16xf32>
    %58 = arith.divf %56, %57 : vector<2x16xf32>
    %59 = vector.extract_strided_slice %52 {offsets = [0, 16], sizes = [2, 16], strides = [1, 1]} : vector<2x64xf32> to vector<2x16xf32>
    %60 = arith.negf %59 : vector<2x16xf32>
    %61 = math.exp %60 : vector<2x16xf32>
    %cst_27 = arith.constant 1.000000e+00 : f32
    %62 = vector.broadcast %cst_27 : f32 to vector<2x16xf32>
    %63 = arith.addf %62, %61 : vector<2x16xf32>
    %64 = arith.divf %62, %63 : vector<2x16xf32>
    %65 = vector.extract_strided_slice %52 {offsets = [0, 32], sizes = [2, 16], strides = [1, 1]} : vector<2x64xf32> to vector<2x16xf32>
    %66 = math.tanh %65 : vector<2x16xf32>
    %67 = vector.extract_strided_slice %52 {offsets = [0, 48], sizes = [2, 16], strides = [1, 1]} : vector<2x64xf32> to vector<2x16xf32>
    %68 = arith.negf %67 : vector<2x16xf32>
    %69 = math.exp %68 : vector<2x16xf32>
    %cst_28 = arith.constant 1.000000e+00 : f32
    %70 = vector.broadcast %cst_28 : f32 to vector<2x16xf32>
    %71 = arith.addf %70, %69 : vector<2x16xf32>
    %72 = arith.divf %70, %71 : vector<2x16xf32>
    %73 = arith.mulf %64, %41 : vector<2x16xf32>
    %74 = arith.mulf %58, %66 : vector<2x16xf32>
    %75 = arith.addf %73, %74 : vector<2x16xf32>
    %76 = math.tanh %75 : vector<2x16xf32>
    %77 = arith.mulf %72, %76 : vector<2x16xf32>
    %78 = vector.broadcast %12 : vector<1x16xf32> to vector<2x16xf32>
    %79 = arith.mulf %77, %78 : vector<2x16xf32>
    %cst_29 = arith.constant dense<0.000000e+00> : vector<2xf32>
    %80 = vector.multi_reduction <add>, %79, %cst_29 [1] : vector<2x16xf32> to vector<2xf32>
    %81 = vector.shape_cast %80 : vector<2xf32> to vector<2x1xf32>
    %82 = vector.broadcast %13 : vector<1x1xf32> to vector<2x1xf32>
    %83 = arith.addf %81, %82 : vector<2x1xf32>
    %84 = vector.extract_strided_slice %10 {offsets = [10, 0], sizes = [2, 64], strides = [1, 1]} : vector<16x64xf32> to vector<2x64xf32>
    %cst_30 = arith.constant dense<0.000000e+00> : vector<2x64xf32>
    %85 = tpu.matmul %77, %11, %cst_30 {dimension_numbers = #tpu.dot_dimension_numbers<[1], [0], [0], [1], [0, 0, 1, 1], [], []>} : vector<2x16xf32>, vector<16x64xf32>, vector<2x64xf32> -> vector<2x64xf32>
    %86 = arith.addf %84, %85 : vector<2x64xf32>
    %87 = vector.extract_strided_slice %86 {offsets = [0, 0], sizes = [2, 16], strides = [1, 1]} : vector<2x64xf32> to vector<2x16xf32>
    %88 = arith.negf %87 : vector<2x16xf32>
    %89 = math.exp %88 : vector<2x16xf32>
    %cst_31 = arith.constant 1.000000e+00 : f32
    %90 = vector.broadcast %cst_31 : f32 to vector<2x16xf32>
    %91 = arith.addf %90, %89 : vector<2x16xf32>
    %92 = arith.divf %90, %91 : vector<2x16xf32>
    %93 = vector.extract_strided_slice %86 {offsets = [0, 16], sizes = [2, 16], strides = [1, 1]} : vector<2x64xf32> to vector<2x16xf32>
    %94 = arith.negf %93 : vector<2x16xf32>
    %95 = math.exp %94 : vector<2x16xf32>
    %cst_32 = arith.constant 1.000000e+00 : f32
    %96 = vector.broadcast %cst_32 : f32 to vector<2x16xf32>
    %97 = arith.addf %96, %95 : vector<2x16xf32>
    %98 = arith.divf %96, %97 : vector<2x16xf32>
    %99 = vector.extract_strided_slice %86 {offsets = [0, 32], sizes = [2, 16], strides = [1, 1]} : vector<2x64xf32> to vector<2x16xf32>
    %100 = math.tanh %99 : vector<2x16xf32>
    %101 = vector.extract_strided_slice %86 {offsets = [0, 48], sizes = [2, 16], strides = [1, 1]} : vector<2x64xf32> to vector<2x16xf32>
    %102 = arith.negf %101 : vector<2x16xf32>
    %103 = math.exp %102 : vector<2x16xf32>
    %cst_33 = arith.constant 1.000000e+00 : f32
    %104 = vector.broadcast %cst_33 : f32 to vector<2x16xf32>
    %105 = arith.addf %104, %103 : vector<2x16xf32>
    %106 = arith.divf %104, %105 : vector<2x16xf32>
    %107 = arith.mulf %98, %75 : vector<2x16xf32>
    %108 = arith.mulf %92, %100 : vector<2x16xf32>
    %109 = arith.addf %107, %108 : vector<2x16xf32>
    %110 = math.tanh %109 : vector<2x16xf32>
    %111 = arith.mulf %106, %110 : vector<2x16xf32>
    %112 = vector.broadcast %12 : vector<1x16xf32> to vector<2x16xf32>
    %113 = arith.mulf %111, %112 : vector<2x16xf32>
    %cst_34 = arith.constant dense<0.000000e+00> : vector<2xf32>
    %114 = vector.multi_reduction <add>, %113, %cst_34 [1] : vector<2x16xf32> to vector<2xf32>
    %115 = vector.shape_cast %114 : vector<2xf32> to vector<2x1xf32>
    %116 = vector.broadcast %13 : vector<1x1xf32> to vector<2x1xf32>
    %117 = arith.addf %115, %116 : vector<2x1xf32>
    %118 = vector.extract_strided_slice %10 {offsets = [8, 0], sizes = [2, 64], strides = [1, 1]} : vector<16x64xf32> to vector<2x64xf32>
    %cst_35 = arith.constant dense<0.000000e+00> : vector<2x64xf32>
    %119 = tpu.matmul %111, %11, %cst_35 {dimension_numbers = #tpu.dot_dimension_numbers<[1], [0], [0], [1], [0, 0, 1, 1], [], []>} : vector<2x16xf32>, vector<16x64xf32>, vector<2x64xf32> -> vector<2x64xf32>
    %120 = arith.addf %118, %119 : vector<2x64xf32>
    %121 = vector.extract_strided_slice %120 {offsets = [0, 0], sizes = [2, 16], strides = [1, 1]} : vector<2x64xf32> to vector<2x16xf32>
    %122 = arith.negf %121 : vector<2x16xf32>
    %123 = math.exp %122 : vector<2x16xf32>
    %cst_36 = arith.constant 1.000000e+00 : f32
    %124 = vector.broadcast %cst_36 : f32 to vector<2x16xf32>
    %125 = arith.addf %124, %123 : vector<2x16xf32>
    %126 = arith.divf %124, %125 : vector<2x16xf32>
    %127 = vector.extract_strided_slice %120 {offsets = [0, 16], sizes = [2, 16], strides = [1, 1]} : vector<2x64xf32> to vector<2x16xf32>
    %128 = arith.negf %127 : vector<2x16xf32>
    %129 = math.exp %128 : vector<2x16xf32>
    %cst_37 = arith.constant 1.000000e+00 : f32
    %130 = vector.broadcast %cst_37 : f32 to vector<2x16xf32>
    %131 = arith.addf %130, %129 : vector<2x16xf32>
    %132 = arith.divf %130, %131 : vector<2x16xf32>
    %133 = vector.extract_strided_slice %120 {offsets = [0, 32], sizes = [2, 16], strides = [1, 1]} : vector<2x64xf32> to vector<2x16xf32>
    %134 = math.tanh %133 : vector<2x16xf32>
    %135 = vector.extract_strided_slice %120 {offsets = [0, 48], sizes = [2, 16], strides = [1, 1]} : vector<2x64xf32> to vector<2x16xf32>
    %136 = arith.negf %135 : vector<2x16xf32>
    %137 = math.exp %136 : vector<2x16xf32>
    %cst_38 = arith.constant 1.000000e+00 : f32
    %138 = vector.broadcast %cst_38 : f32 to vector<2x16xf32>
    %139 = arith.addf %138, %137 : vector<2x16xf32>
    %140 = arith.divf %138, %139 : vector<2x16xf32>
    %141 = arith.mulf %132, %109 : vector<2x16xf32>
    %142 = arith.mulf %126, %134 : vector<2x16xf32>
    %143 = arith.addf %141, %142 : vector<2x16xf32>
    %144 = math.tanh %143 : vector<2x16xf32>
    %145 = arith.mulf %140, %144 : vector<2x16xf32>
    %146 = vector.broadcast %12 : vector<1x16xf32> to vector<2x16xf32>
    %147 = arith.mulf %145, %146 : vector<2x16xf32>
    %cst_39 = arith.constant dense<0.000000e+00> : vector<2xf32>
    %148 = vector.multi_reduction <add>, %147, %cst_39 [1] : vector<2x16xf32> to vector<2xf32>
    %149 = vector.shape_cast %148 : vector<2xf32> to vector<2x1xf32>
    %150 = vector.broadcast %13 : vector<1x1xf32> to vector<2x1xf32>
    %151 = arith.addf %149, %150 : vector<2x1xf32>
    %152 = vector.extract_strided_slice %10 {offsets = [6, 0], sizes = [2, 64], strides = [1, 1]} : vector<16x64xf32> to vector<2x64xf32>
    %cst_40 = arith.constant dense<0.000000e+00> : vector<2x64xf32>
    %153 = tpu.matmul %145, %11, %cst_40 {dimension_numbers = #tpu.dot_dimension_numbers<[1], [0], [0], [1], [0, 0, 1, 1], [], []>} : vector<2x16xf32>, vector<16x64xf32>, vector<2x64xf32> -> vector<2x64xf32>
    %154 = arith.addf %152, %153 : vector<2x64xf32>
    %155 = vector.extract_strided_slice %154 {offsets = [0, 0], sizes = [2, 16], strides = [1, 1]} : vector<2x64xf32> to vector<2x16xf32>
    %156 = arith.negf %155 : vector<2x16xf32>
    %157 = math.exp %156 : vector<2x16xf32>
    %cst_41 = arith.constant 1.000000e+00 : f32
    %158 = vector.broadcast %cst_41 : f32 to vector<2x16xf32>
    %159 = arith.addf %158, %157 : vector<2x16xf32>
    %160 = arith.divf %158, %159 : vector<2x16xf32>
    %161 = vector.extract_strided_slice %154 {offsets = [0, 16], sizes = [2, 16], strides = [1, 1]} : vector<2x64xf32> to vector<2x16xf32>
    %162 = arith.negf %161 : vector<2x16xf32>
    %163 = math.exp %162 : vector<2x16xf32>
    %cst_42 = arith.constant 1.000000e+00 : f32
    %164 = vector.broadcast %cst_42 : f32 to vector<2x16xf32>
    %165 = arith.addf %164, %163 : vector<2x16xf32>
    %166 = arith.divf %164, %165 : vector<2x16xf32>
    %167 = vector.extract_strided_slice %154 {offsets = [0, 32], sizes = [2, 16], strides = [1, 1]} : vector<2x64xf32> to vector<2x16xf32>
    %168 = math.tanh %167 : vector<2x16xf32>
    %169 = vector.extract_strided_slice %154 {offsets = [0, 48], sizes = [2, 16], strides = [1, 1]} : vector<2x64xf32> to vector<2x16xf32>
    %170 = arith.negf %169 : vector<2x16xf32>
    %171 = math.exp %170 : vector<2x16xf32>
    %cst_43 = arith.constant 1.000000e+00 : f32
    %172 = vector.broadcast %cst_43 : f32 to vector<2x16xf32>
    %173 = arith.addf %172, %171 : vector<2x16xf32>
    %174 = arith.divf %172, %173 : vector<2x16xf32>
    %175 = arith.mulf %166, %143 : vector<2x16xf32>
    %176 = arith.mulf %160, %168 : vector<2x16xf32>
    %177 = arith.addf %175, %176 : vector<2x16xf32>
    %178 = math.tanh %177 : vector<2x16xf32>
    %179 = arith.mulf %174, %178 : vector<2x16xf32>
    %180 = vector.broadcast %12 : vector<1x16xf32> to vector<2x16xf32>
    %181 = arith.mulf %179, %180 : vector<2x16xf32>
    %cst_44 = arith.constant dense<0.000000e+00> : vector<2xf32>
    %182 = vector.multi_reduction <add>, %181, %cst_44 [1] : vector<2x16xf32> to vector<2xf32>
    %183 = vector.shape_cast %182 : vector<2xf32> to vector<2x1xf32>
    %184 = vector.broadcast %13 : vector<1x1xf32> to vector<2x1xf32>
    %185 = arith.addf %183, %184 : vector<2x1xf32>
    %186 = vector.extract_strided_slice %10 {offsets = [4, 0], sizes = [2, 64], strides = [1, 1]} : vector<16x64xf32> to vector<2x64xf32>
    %cst_45 = arith.constant dense<0.000000e+00> : vector<2x64xf32>
    %187 = tpu.matmul %179, %11, %cst_45 {dimension_numbers = #tpu.dot_dimension_numbers<[1], [0], [0], [1], [0, 0, 1, 1], [], []>} : vector<2x16xf32>, vector<16x64xf32>, vector<2x64xf32> -> vector<2x64xf32>
    %188 = arith.addf %186, %187 : vector<2x64xf32>
    %189 = vector.extract_strided_slice %188 {offsets = [0, 0], sizes = [2, 16], strides = [1, 1]} : vector<2x64xf32> to vector<2x16xf32>
    %190 = arith.negf %189 : vector<2x16xf32>
    %191 = math.exp %190 : vector<2x16xf32>
    %cst_46 = arith.constant 1.000000e+00 : f32
    %192 = vector.broadcast %cst_46 : f32 to vector<2x16xf32>
    %193 = arith.addf %192, %191 : vector<2x16xf32>
    %194 = arith.divf %192, %193 : vector<2x16xf32>
    %195 = vector.extract_strided_slice %188 {offsets = [0, 16], sizes = [2, 16], strides = [1, 1]} : vector<2x64xf32> to vector<2x16xf32>
    %196 = arith.negf %195 : vector<2x16xf32>
    %197 = math.exp %196 : vector<2x16xf32>
    %cst_47 = arith.constant 1.000000e+00 : f32
    %198 = vector.broadcast %cst_47 : f32 to vector<2x16xf32>
    %199 = arith.addf %198, %197 : vector<2x16xf32>
    %200 = arith.divf %198, %199 : vector<2x16xf32>
    %201 = vector.extract_strided_slice %188 {offsets = [0, 32], sizes = [2, 16], strides = [1, 1]} : vector<2x64xf32> to vector<2x16xf32>
    %202 = math.tanh %201 : vector<2x16xf32>
    %203 = vector.extract_strided_slice %188 {offsets = [0, 48], sizes = [2, 16], strides = [1, 1]} : vector<2x64xf32> to vector<2x16xf32>
    %204 = arith.negf %203 : vector<2x16xf32>
    %205 = math.exp %204 : vector<2x16xf32>
    %cst_48 = arith.constant 1.000000e+00 : f32
    %206 = vector.broadcast %cst_48 : f32 to vector<2x16xf32>
    %207 = arith.addf %206, %205 : vector<2x16xf32>
    %208 = arith.divf %206, %207 : vector<2x16xf32>
    %209 = arith.mulf %200, %177 : vector<2x16xf32>
    %210 = arith.mulf %194, %202 : vector<2x16xf32>
    %211 = arith.addf %209, %210 : vector<2x16xf32>
    %212 = math.tanh %211 : vector<2x16xf32>
    %213 = arith.mulf %208, %212 : vector<2x16xf32>
    %214 = vector.broadcast %12 : vector<1x16xf32> to vector<2x16xf32>
    %215 = arith.mulf %213, %214 : vector<2x16xf32>
    %cst_49 = arith.constant dense<0.000000e+00> : vector<2xf32>
    %216 = vector.multi_reduction <add>, %215, %cst_49 [1] : vector<2x16xf32> to vector<2xf32>
    %217 = vector.shape_cast %216 : vector<2xf32> to vector<2x1xf32>
    %218 = vector.broadcast %13 : vector<1x1xf32> to vector<2x1xf32>
    %219 = arith.addf %217, %218 : vector<2x1xf32>
    %220 = vector.extract_strided_slice %10 {offsets = [2, 0], sizes = [2, 64], strides = [1, 1]} : vector<16x64xf32> to vector<2x64xf32>
    %cst_50 = arith.constant dense<0.000000e+00> : vector<2x64xf32>
    %221 = tpu.matmul %213, %11, %cst_50 {dimension_numbers = #tpu.dot_dimension_numbers<[1], [0], [0], [1], [0, 0, 1, 1], [], []>} : vector<2x16xf32>, vector<16x64xf32>, vector<2x64xf32> -> vector<2x64xf32>
    %222 = arith.addf %220, %221 : vector<2x64xf32>
    %223 = vector.extract_strided_slice %222 {offsets = [0, 0], sizes = [2, 16], strides = [1, 1]} : vector<2x64xf32> to vector<2x16xf32>
    %224 = arith.negf %223 : vector<2x16xf32>
    %225 = math.exp %224 : vector<2x16xf32>
    %cst_51 = arith.constant 1.000000e+00 : f32
    %226 = vector.broadcast %cst_51 : f32 to vector<2x16xf32>
    %227 = arith.addf %226, %225 : vector<2x16xf32>
    %228 = arith.divf %226, %227 : vector<2x16xf32>
    %229 = vector.extract_strided_slice %222 {offsets = [0, 16], sizes = [2, 16], strides = [1, 1]} : vector<2x64xf32> to vector<2x16xf32>
    %230 = arith.negf %229 : vector<2x16xf32>
    %231 = math.exp %230 : vector<2x16xf32>
    %cst_52 = arith.constant 1.000000e+00 : f32
    %232 = vector.broadcast %cst_52 : f32 to vector<2x16xf32>
    %233 = arith.addf %232, %231 : vector<2x16xf32>
    %234 = arith.divf %232, %233 : vector<2x16xf32>
    %235 = vector.extract_strided_slice %222 {offsets = [0, 32], sizes = [2, 16], strides = [1, 1]} : vector<2x64xf32> to vector<2x16xf32>
    %236 = math.tanh %235 : vector<2x16xf32>
    %237 = vector.extract_strided_slice %222 {offsets = [0, 48], sizes = [2, 16], strides = [1, 1]} : vector<2x64xf32> to vector<2x16xf32>
    %238 = arith.negf %237 : vector<2x16xf32>
    %239 = math.exp %238 : vector<2x16xf32>
    %cst_53 = arith.constant 1.000000e+00 : f32
    %240 = vector.broadcast %cst_53 : f32 to vector<2x16xf32>
    %241 = arith.addf %240, %239 : vector<2x16xf32>
    %242 = arith.divf %240, %241 : vector<2x16xf32>
    %243 = arith.mulf %234, %211 : vector<2x16xf32>
    %244 = arith.mulf %228, %236 : vector<2x16xf32>
    %245 = arith.addf %243, %244 : vector<2x16xf32>
    %246 = math.tanh %245 : vector<2x16xf32>
    %247 = arith.mulf %242, %246 : vector<2x16xf32>
    %248 = vector.broadcast %12 : vector<1x16xf32> to vector<2x16xf32>
    %249 = arith.mulf %247, %248 : vector<2x16xf32>
    %cst_54 = arith.constant dense<0.000000e+00> : vector<2xf32>
    %250 = vector.multi_reduction <add>, %249, %cst_54 [1] : vector<2x16xf32> to vector<2xf32>
    %251 = vector.shape_cast %250 : vector<2xf32> to vector<2x1xf32>
    %252 = vector.broadcast %13 : vector<1x1xf32> to vector<2x1xf32>
    %253 = arith.addf %251, %252 : vector<2x1xf32>
    %254 = vector.extract_strided_slice %10 {offsets = [0, 0], sizes = [2, 64], strides = [1, 1]} : vector<16x64xf32> to vector<2x64xf32>
    %cst_55 = arith.constant dense<0.000000e+00> : vector<2x64xf32>
    %255 = tpu.matmul %247, %11, %cst_55 {dimension_numbers = #tpu.dot_dimension_numbers<[1], [0], [0], [1], [0, 0, 1, 1], [], []>} : vector<2x16xf32>, vector<16x64xf32>, vector<2x64xf32> -> vector<2x64xf32>
    %256 = arith.addf %254, %255 : vector<2x64xf32>
    %257 = vector.extract_strided_slice %256 {offsets = [0, 0], sizes = [2, 16], strides = [1, 1]} : vector<2x64xf32> to vector<2x16xf32>
    %258 = arith.negf %257 : vector<2x16xf32>
    %259 = math.exp %258 : vector<2x16xf32>
    %cst_56 = arith.constant 1.000000e+00 : f32
    %260 = vector.broadcast %cst_56 : f32 to vector<2x16xf32>
    %261 = arith.addf %260, %259 : vector<2x16xf32>
    %262 = arith.divf %260, %261 : vector<2x16xf32>
    %263 = vector.extract_strided_slice %256 {offsets = [0, 16], sizes = [2, 16], strides = [1, 1]} : vector<2x64xf32> to vector<2x16xf32>
    %264 = arith.negf %263 : vector<2x16xf32>
    %265 = math.exp %264 : vector<2x16xf32>
    %cst_57 = arith.constant 1.000000e+00 : f32
    %266 = vector.broadcast %cst_57 : f32 to vector<2x16xf32>
    %267 = arith.addf %266, %265 : vector<2x16xf32>
    %268 = arith.divf %266, %267 : vector<2x16xf32>
    %269 = vector.extract_strided_slice %256 {offsets = [0, 32], sizes = [2, 16], strides = [1, 1]} : vector<2x64xf32> to vector<2x16xf32>
    %270 = math.tanh %269 : vector<2x16xf32>
    %271 = vector.extract_strided_slice %256 {offsets = [0, 48], sizes = [2, 16], strides = [1, 1]} : vector<2x64xf32> to vector<2x16xf32>
    %272 = arith.negf %271 : vector<2x16xf32>
    %273 = math.exp %272 : vector<2x16xf32>
    %cst_58 = arith.constant 1.000000e+00 : f32
    %274 = vector.broadcast %cst_58 : f32 to vector<2x16xf32>
    %275 = arith.addf %274, %273 : vector<2x16xf32>
    %276 = arith.divf %274, %275 : vector<2x16xf32>
    %277 = arith.mulf %268, %245 : vector<2x16xf32>
    %278 = arith.mulf %262, %270 : vector<2x16xf32>
    %279 = arith.addf %277, %278 : vector<2x16xf32>
    %280 = math.tanh %279 : vector<2x16xf32>
    %281 = arith.mulf %276, %280 : vector<2x16xf32>
    %282 = vector.broadcast %12 : vector<1x16xf32> to vector<2x16xf32>
    %283 = arith.mulf %281, %282 : vector<2x16xf32>
    %cst_59 = arith.constant dense<0.000000e+00> : vector<2xf32>
    %284 = vector.multi_reduction <add>, %283, %cst_59 [1] : vector<2x16xf32> to vector<2xf32>
    %285 = vector.shape_cast %284 : vector<2xf32> to vector<2x1xf32>
    %286 = vector.broadcast %13 : vector<1x1xf32> to vector<2x1xf32>
    %287 = arith.addf %285, %286 : vector<2x1xf32>
    %288 = arith.maximumf %287, %253 : vector<2x1xf32>
    %289 = arith.maximumf %288, %219 : vector<2x1xf32>
    %290 = arith.maximumf %289, %185 : vector<2x1xf32>
    %291 = arith.maximumf %290, %151 : vector<2x1xf32>
    %292 = arith.maximumf %291, %117 : vector<2x1xf32>
    %293 = arith.maximumf %292, %83 : vector<2x1xf32>
    %294 = arith.maximumf %293, %49 : vector<2x1xf32>
    %295 = arith.subf %287, %294 : vector<2x1xf32>
    %296 = math.exp %295 : vector<2x1xf32>
    %297 = arith.subf %253, %294 : vector<2x1xf32>
    %298 = math.exp %297 : vector<2x1xf32>
    %299 = arith.subf %219, %294 : vector<2x1xf32>
    %300 = math.exp %299 : vector<2x1xf32>
    %301 = arith.subf %185, %294 : vector<2x1xf32>
    %302 = math.exp %301 : vector<2x1xf32>
    %303 = arith.subf %151, %294 : vector<2x1xf32>
    %304 = math.exp %303 : vector<2x1xf32>
    %305 = arith.subf %117, %294 : vector<2x1xf32>
    %306 = math.exp %305 : vector<2x1xf32>
    %307 = arith.subf %83, %294 : vector<2x1xf32>
    %308 = math.exp %307 : vector<2x1xf32>
    %309 = arith.subf %49, %294 : vector<2x1xf32>
    %310 = math.exp %309 : vector<2x1xf32>
    %311 = arith.addf %296, %298 : vector<2x1xf32>
    %312 = arith.addf %311, %300 : vector<2x1xf32>
    %313 = arith.addf %312, %302 : vector<2x1xf32>
    %314 = arith.addf %313, %304 : vector<2x1xf32>
    %315 = arith.addf %314, %306 : vector<2x1xf32>
    %316 = arith.addf %315, %308 : vector<2x1xf32>
    %317 = arith.addf %316, %310 : vector<2x1xf32>
    %cst_60 = arith.constant 1.000000e+00 : f32
    %318 = vector.broadcast %cst_60 : f32 to vector<2x1xf32>
    %319 = arith.divf %318, %317 : vector<2x1xf32>
    %cst_61 = arith.constant 0.000000e+00 : f32
    %320 = vector.broadcast %cst_61 : f32 to vector<2x32xf32>
    %321 = arith.mulf %296, %319 : vector<2x1xf32>
    %322 = vector.extract_strided_slice %5 {offsets = [0, 0], sizes = [2, 32], strides = [1, 1]} : vector<16x32xf32> to vector<2x32xf32>
    %323 = vector.broadcast %321 : vector<2x1xf32> to vector<2x32xf32>
    %324 = arith.mulf %323, %322 : vector<2x32xf32>
    %325 = arith.addf %320, %324 : vector<2x32xf32>
    %326 = arith.mulf %298, %319 : vector<2x1xf32>
    %327 = vector.extract_strided_slice %5 {offsets = [2, 0], sizes = [2, 32], strides = [1, 1]} : vector<16x32xf32> to vector<2x32xf32>
    %328 = vector.broadcast %326 : vector<2x1xf32> to vector<2x32xf32>
    %329 = arith.mulf %328, %327 : vector<2x32xf32>
    %330 = arith.addf %325, %329 : vector<2x32xf32>
    %331 = arith.mulf %300, %319 : vector<2x1xf32>
    %332 = vector.extract_strided_slice %5 {offsets = [4, 0], sizes = [2, 32], strides = [1, 1]} : vector<16x32xf32> to vector<2x32xf32>
    %333 = vector.broadcast %331 : vector<2x1xf32> to vector<2x32xf32>
    %334 = arith.mulf %333, %332 : vector<2x32xf32>
    %335 = arith.addf %330, %334 : vector<2x32xf32>
    %336 = arith.mulf %302, %319 : vector<2x1xf32>
    %337 = vector.extract_strided_slice %5 {offsets = [6, 0], sizes = [2, 32], strides = [1, 1]} : vector<16x32xf32> to vector<2x32xf32>
    %338 = vector.broadcast %336 : vector<2x1xf32> to vector<2x32xf32>
    %339 = arith.mulf %338, %337 : vector<2x32xf32>
    %340 = arith.addf %335, %339 : vector<2x32xf32>
    %341 = arith.mulf %304, %319 : vector<2x1xf32>
    %342 = vector.extract_strided_slice %5 {offsets = [8, 0], sizes = [2, 32], strides = [1, 1]} : vector<16x32xf32> to vector<2x32xf32>
    %343 = vector.broadcast %341 : vector<2x1xf32> to vector<2x32xf32>
    %344 = arith.mulf %343, %342 : vector<2x32xf32>
    %345 = arith.addf %340, %344 : vector<2x32xf32>
    %346 = arith.mulf %306, %319 : vector<2x1xf32>
    %347 = vector.extract_strided_slice %5 {offsets = [10, 0], sizes = [2, 32], strides = [1, 1]} : vector<16x32xf32> to vector<2x32xf32>
    %348 = vector.broadcast %346 : vector<2x1xf32> to vector<2x32xf32>
    %349 = arith.mulf %348, %347 : vector<2x32xf32>
    %350 = arith.addf %345, %349 : vector<2x32xf32>
    %351 = arith.mulf %308, %319 : vector<2x1xf32>
    %352 = vector.extract_strided_slice %5 {offsets = [12, 0], sizes = [2, 32], strides = [1, 1]} : vector<16x32xf32> to vector<2x32xf32>
    %353 = vector.broadcast %351 : vector<2x1xf32> to vector<2x32xf32>
    %354 = arith.mulf %353, %352 : vector<2x32xf32>
    %355 = arith.addf %350, %354 : vector<2x32xf32>
    %356 = arith.mulf %310, %319 : vector<2x1xf32>
    %357 = vector.extract_strided_slice %5 {offsets = [14, 0], sizes = [2, 32], strides = [1, 1]} : vector<16x32xf32> to vector<2x32xf32>
    %358 = vector.broadcast %356 : vector<2x1xf32> to vector<2x32xf32>
    %359 = arith.mulf %358, %357 : vector<2x32xf32>
    %360 = arith.addf %355, %359 : vector<2x32xf32>
    %c0_62 = arith.constant 0 : index
    %c0_63 = arith.constant 0 : index
    %361 = vector.load %arg8[%c0_62, %c0_63] : memref<16x32xf32, #tpu.memory_space<vmem>>, vector<16x32xf32>
    %cst_64 = arith.constant dense<0.000000e+00> : vector<2x32xf32>
    %362 = tpu.matmul %281, %361, %cst_64 {dimension_numbers = #tpu.dot_dimension_numbers<[1], [0], [0], [1], [0, 0, 1, 1], [], []>} : vector<2x16xf32>, vector<16x32xf32>, vector<2x32xf32> -> vector<2x32xf32>
    %c0_65 = arith.constant 0 : index
    %c0_66 = arith.constant 0 : index
    %363 = vector.load %arg9[%c0_65, %c0_66] : memref<1x32xf32, #tpu.memory_space<vmem>>, vector<1x32xf32>
    %364 = vector.broadcast %363 : vector<1x32xf32> to vector<2x32xf32>
    %365 = arith.addf %362, %364 : vector<2x32xf32>
    %366 = math.tanh %365 : vector<2x32xf32>
    %367 = arith.mulf %366, %360 : vector<2x32xf32>
    %c0_67 = arith.constant 0 : index
    %c0_68 = arith.constant 0 : index
    %368 = vector.load %arg10[%c0_67, %c0_68] : memref<32x16xf32, #tpu.memory_space<vmem>>, vector<32x16xf32>
    %cst_69 = arith.constant dense<0.000000e+00> : vector<2x16xf32>
    %369 = tpu.matmul %367, %368, %cst_69 {dimension_numbers = #tpu.dot_dimension_numbers<[1], [0], [0], [1], [0, 0, 1, 1], [], []>} : vector<2x32xf32>, vector<32x16xf32>, vector<2x16xf32> -> vector<2x16xf32>
    %c0_70 = arith.constant 0 : index
    %c0_71 = arith.constant 0 : index
    %370 = vector.load %arg11[%c0_70, %c0_71] : memref<1x16xf32, #tpu.memory_space<vmem>>, vector<1x16xf32>
    %371 = vector.broadcast %370 : vector<1x16xf32> to vector<2x16xf32>
    %372 = arith.addf %369, %371 : vector<2x16xf32>
    %c0_72 = arith.constant 0 : index
    %c0_73 = arith.constant 0 : index
    %373 = vector.load %arg14[%c0_72, %c0_73] : memref<2x16xf32, #tpu.memory_space<vmem>>, vector<2x16xf32>
    tpu.vector_store %arg14[%c0_72, %c0_73], %372 {strides = array<i32>} : memref<2x16xf32, #tpu.memory_space<vmem>>, vector<2x16xf32>,
    return
  }
}

</mosaic_0001>

<bundles_post_ra>
// kernel: tpu_custom_call.1
= control target key start
LH: loop header
LB: loop body
LE: loop exit
PB: predicated region body
PF: predicated region fallthrough
CT: control target
= control target key end

     0   :  { %s2355_s0 = inlined_call_operand.vmem [shape: f32[16,32], index: 0, kind: input, shape index: {}]   ;;  %s2356_s1 = inlined_call_operand.vmem [shape: f32[32,32], index: 1, kind: input, shape index: {}]   ;;  %s2357_s2 = inlined_call_operand.vmem [shape: f32[1,32], index: 2, kind: input, shape index: {}]   ;;  %s2358_s3 = inlined_call_operand.hbm [shape: f32[32,64], index: 3, kind: input, shape index: {}]   ;;  %s2359_s4 = inlined_call_operand.hbm [shape: f32[16,64], index: 4, kind: input, shape index: {}]   ;;  %s2360_s5 = inlined_call_operand.vmem [shape: f32[1,64], index: 5, kind: input, shape index: {}]   ;;  %s2361_s6 = inlined_call_operand.vmem [shape: f32[1,16], index: 6, kind: input, shape index: {}]   ;;  %s2362_s7 = inlined_call_operand.<no memory space> [shape: f32[1,1], index: 7, kind: input, shape index: {}]   ;;  %s2363_s8 = inlined_call_operand.hbm [shape: f32[16,32], index: 8, kind: input, shape index: {}]   ;;  %s2364_s9 = inlined_call_operand.vmem [shape: f32[1,32], index: 9, kind: input, shape index: {}]   ;;  %s2365_s10 = inlined_call_operand.vmem [shape: f32[32,16], index: 10, kind: input, shape index: {}]   ;;  %s2366_s11 = inlined_call_operand.vmem [shape: f32[1,16], index: 11, kind: input, shape index: {}]   ;;  %s2367_s12 = inlined_call_operand.vmem [shape: f32[2,16], index: 12, kind: input, shape index: {}]   ;;  %s2368_s13 = inlined_call_operand.vmem [shape: f32[2,16], index: 13, kind: input, shape index: {}]   ;;  %s2369_s14 = inlined_call_operand.hbm [shape: f32[2,16], index: 14, kind: output, shape index: {}]  }
   0x1   :  { %v19_v0 = vstv %s2362_s7 }
   0x2   :  { %20 = vst [vmem:[#allocation2] sm:$0x1] %v19_v0 }
   0x3   :  { %21 = vsyncpa [#allocation4], 0 }
   0x4   :  { %22 = vsyncpa [#allocation7], 0 }
   0x5   :  { %23 = vsyncpa [#allocation5], 0  ;;  %s1994_s15 = smov [#allocation6]   ;;  %s1995_s17 = smov [#allocation3]  }
   0x6   :  { %s47_s16 = sshll.u32 %s1994_s15, 4  ;;  %s35_s18 = sshll.u32 %s1995_s17, 4  ;;  %s48_s16 = int_to_ptr.vmem [resolvable:$true] %s47_s16  ;;  %s2087_s18 = int_to_ptr.vmem [resolvable:$true] %s35_s18 }
   0x7   :  { %s1900_s21 = scalar_lea.hbm %s2359_s4, 256 }
   0x8   :  { %p1901_p0 = scmp.ne.s32.totalorder %s2359_s4, %s1900_s21  ;;  %p1904_p1 = scmp.lt.u32.totalorder %s1900_s21, %s2359_s4 }
   0xa   :  { %p1906_p2 = pnand %p1904_p1, %p1901_p0 }
   0xc   :  { %1909 = shalt.err (!%p1906_p2)
}
   0xd   :  { %s1910_s25 = scalar_lea.vmem %s48_s16, 256  ;;  %p1915_p4 = scmp.lt.s32.totalorder %s48_s16, %s48_s16 }
   0xe   :  { %p1911_p3 = scmp.ne.s32.totalorder %s48_s16, %s1910_s25  ;;  %p1916_p5 = scmp.lt.s32.totalorder %s1910_s25, %s1910_s25 }
  0x10   :  { %p1917_p6 = por %p1916_p5, %p1915_p4 }
  0x12   :  { %p1918_p7 = pnand %p1917_p6, %p1911_p3 }
  0x14   :  { %1921 = shalt.err (!%p1918_p7)
}
  0x15   :  { %s1996_s26 = smov 128   ;;  %s1997_s27 = smov 8  }
  0x16   :  { %53 = dma.hbm_to_vmem [thread:$0]  %s2359_s4, 256, %s48_s16, [#allocation7], %s1996_s26, %s1996_s26, %s1997_s27  }
  0x17   :  { %s1922_s17 = scalar_lea.hbm %s2358_s3, 512 }
  0x18   :  { %p1923_p8 = scmp.ne.s32.totalorder %s2358_s3, %s1922_s17  ;;  %p1926_p9 = scmp.lt.u32.totalorder %s1922_s17, %s2358_s3 }
  0x1a   :  { %p1928_p10 = pnand %p1926_p9, %p1923_p8 }
  0x1c   :  { %1931 = shalt.err (!%p1928_p10)
}
  0x1d   :  { %s1932_s23 = scalar_lea.vmem %s2087_s18, 512  ;;  %p1937_p12 = scmp.lt.s32.totalorder %s2087_s18, %s2087_s18 }
  0x1e   :  { %p1933_p11 = scmp.ne.s32.totalorder %s2087_s18, %s1932_s23  ;;  %p1938_p13 = scmp.lt.s32.totalorder %s1932_s23, %s1932_s23 }
  0x20   :  { %p1939_p0 = por %p1938_p13, %p1937_p12 }
  0x22   :  { %p1940_p1 = pnand %p1939_p0, %p1933_p11 }
  0x24   :  { %1943 = shalt.err (!%p1940_p1)
}
  0x25   :  { %41 = dma.hbm_to_vmem [thread:$0]  %s2358_s3, 512, %s2087_s18, [#allocation4], %s1996_s26, %s1996_s26, %s1997_s27  }
  0x26   :  { %s1998_s7 = smov [#allocation8]   ;;  %s1944_s29 = scalar_lea.hbm %s2363_s8, 256 }
  0x27   :  { %s65_s24 = sshll.u32 %s1998_s7, 4  ;;  %p1945_p2 = scmp.ne.s32.totalorder %s2363_s8, %s1944_s29  ;;  %s66_s24 = int_to_ptr.vmem [resolvable:$true] %s65_s24 }
  0x28   :  { %p1948_p3 = scmp.lt.u32.totalorder %s1944_s29, %s2363_s8 }
  0x2a   :  { %p1950_p4 = pnand %p1948_p3, %p1945_p2 }
  0x2c   :  { %1953 = shalt.err (!%p1950_p4)
}
  0x2d   :  { %s1954_s20 = scalar_lea.vmem %s66_s24, 256  ;;  %p1959_p6 = scmp.lt.s32.totalorder %s66_s24, %s66_s24 }
  0x2e   :  { %p1955_p5 = scmp.ne.s32.totalorder %s66_s24, %s1954_s20  ;;  %p1960_p7 = scmp.lt.s32.totalorder %s1954_s20, %s1954_s20 }
  0x30   :  { %p1961_p8 = por %p1960_p7, %p1959_p6 }
  0x32   :  { %p1962_p9 = pnand %p1961_p8, %p1955_p5 }
  0x34   :  { %1965 = shalt.err (!%p1962_p9)
}
  0x35   :  { %71 = dma.hbm_to_vmem [thread:$0]  %s2363_s8, 256, %s66_s24, [#allocation7], %s1996_s26, %s1996_s26, %s1997_s27  }
  0x36   :  { %1988 = dma.done.wait [#allocation4], 512  }
  0x37   :  { %1989 = vsyncadd [#allocation4], 4294966784 }
  0x38   :  { %1990 = dma.done.wait [#allocation7], 512  }
  0x39   :  { %1991 = vsyncadd [#allocation7], 4294966784  ;;  %vm104_vm0 = vcmask 261120   ;;  %v93_v1 = vld [vmem:[%s2356_s1] sm:$0xff]  ;;  %v94_v2 = vld [vmem:[%s2356_s1 + $0x8] sm:$0xff]  ;;  %v1999_v17 = vmov 0.0|0.0  }
  0x3a   :  { %v95_v3 = vld [vmem:[%s2356_s1 + $0x10] sm:$0xff]  ;;  %v1750_v4 = vpack.c.bf16 %v94_v2, %v93_v1  ;;  %v96_v5 = vld [vmem:[%s2356_s1 + $0x18] sm:$0xff]  ;;  %v91_v6 = vld [vmem:[%s2355_s0] sm:$0xff]  ;;  %vm2000_vm1 = vmmov 0   ;;  %v2001_v19 = vmov 0.0   ;;  %vm284_vm2 = vcmask 130048  }
  0x3b   :  { %v1754_v7 = vpack.c.bf16 %v96_v5, %v95_v3  ;;  %1662 = vmatprep.mubr.msk.f32.mxu0 %vm104_vm0, %v91_v6  ;;  %v186_v8 = vld [vmem:[#allocation3] sm:$0xff]  ;;  %v187_v9 = vld [vmem:[#allocation3 + $0x8] sm:$0xff]  ;;  %v188_v12 = vld [vmem:[#allocation3 + $0x10] sm:$0xff]  ;;  %s2002_s19 = smov 96   ;;  %s2005_s20 = smov 80   ;;  %vm644_vm3 = vcmask 125954  }
  0x3c   :  { %1751 = vmatprep.subr.bf16.mxu0 %v1750_v4  ;;  %v1758_v10 = vpack.c.bf16 %v187_v9, %v186_v8  ;;  %v92_v11 = vld [vmem:[%s2355_s0 + $0x8] sm:$0xff]  ;;  %v189_v13 = vld [vmem:[#allocation3 + $0x18] sm:$0xff]  ;;  %s2006_s21 = smov 48   ;;  %vm758_vm4 = vcmask 123904   ;;  %vm527_vm5 = vcmask 128004   ;;  %vm404_vm6 = vcmask 130054  }
  0x3d   :  { %1753 = vmatpush3.bf16.msra.mxu0 %v1750_v4  ;;  %v278_v14 = vld [vmem:[#allocation6] sm:$0xff]  ;;  %v1762_v15 = vpack.c.bf16 %v189_v13, %v188_v12  ;;  %v279_v16 = vld [vmem:[#allocation6 + $0x8] sm:$0xff]  ;;  %v1582_v21 = vld [vmem:[%s2357_s2] ss:$0 sm:$0xff]  ;;  %s2008_s24 = smov [#allocation9]  }
  0x3e   :  { %1755 = vmatprep.subr.bf16.mxu0 %v1754_v7  ;;  %1759 = vmatprep.subr.bf16.mxu1 %v1758_v10  ;;  %v2160_v18 = vpack.c.bf16 %v279_v16, %v278_v14  ;;  %v282_v20 = vld [vmem:[%s2367_s12] sm:$0x3]  ;;  %s1572_s28 = sshll.u32 %s2008_s24, 4  ;;  %s1573_s28 = int_to_ptr.vmem [resolvable:$true] %s1572_s28 }
  0x3f   :  { %1761 = vmatpush3.bf16.msra.mxu1 %v1758_v10  ;;  %v1585_v28 = vld [vmem:[%s2360_s5] ss:$0 sm:$0xff]  ;;  %s2003_s5 = smov 16   ;;  %s1966_s0 = scalar_lea.vmem %s1573_s28, 32 }
  0x40   :  { %1763 = vmatprep.subr.bf16.mxu1 %v1762_v15  ;;  %v283_v35 = vld [vmem:[%s2368_s13] sm:$0x3]  ;;  %s2004_s13 = smov 32   ;;  %p1967_p10 = scmp.ne.s32.totalorder %s1573_s28, %s1966_s0 }
  0x41   :  { %1757 = vmatpush3.bf16.msra.mxu0 %v1754_v7  ;;  %v370_v37 = vrot.slane %v283_v35, 2  ;;  %p1971_p11 = scmp.lt.s32.totalorder %s1573_s28, %s1573_s28  ;;  %p1972_p12 = scmp.lt.s32.totalorder %s1966_s0, %s1966_s0 }
  0x42   :  { %1766 = vmatprep.subr.bf16.mxu0 %v1999_v17 }
  0x43   :  { %1765 = vmatpush3.bf16.msra.mxu1 %v1762_v15  ;;  %p1973_p13 = por %p1972_p12, %p1971_p11 }
  0x44   :  { %1663 = vmatmul.mubr.msk.f32.vlgmr.msra.gmra.mrb[0].mxu0 %vm104_vm0, %v92_v11  ;;  %1769 = vmatprep.subr.bf16.mxu1 %v1999_v17 }
  0x45   :  { %1768 = vmatpush3.bf16.msra.mxu0 %v2160_v18  ;;  %1680 = vmatprep.mubr.msk.f32.mxu0 %vm2000_vm1, %v2001_v19  ;;  %p1974_p0 = pnand %p1973_p13, %p1967_p10 }
  0x46   :  { %1772 = vmatprep.subr.bf16.mxu0 %v1999_v17 }
  0x48   :  { %1681 = vmatmul.mubr.msk.f32.vlgmr.msra.gmra.mrb[2].mxu0 %vm284_vm2, %v282_v20 }
  0x49   :  { %1774 = vmatpush3.bf16.msra.mxu0 %v2160_v18  ;;  %1694 = vmatprep.mubr.msk.f32.mxu0 %vm2000_vm1, %v2001_v19 }
  0x4a   :  { %1778 = vmatprep.subr.bf16.mxu0 %v1999_v17 }
 0x117   :  { %v1664_v22 = vpop.f32.mrb[0].mxu0 }
 0x118   :  { %v177_v23 = vpop.f32.mrb[1].mxu0  ;;  %v2180_v25 = vadd.f32 %v1664_v22, %v1582_v21 }
 0x119   :  { %v2178_v24 = vadd.f32 %v1582_v21, %v177_v23 }
 0x11b   :  { %1673 = vmatprep.mubr.msk.f32.mxu1 %vm104_vm0, %v2178_v24  ;;  %v354_v26 = vpop.f32.mrb[2].mxu0 }
 0x11c   :  { %1674 = vmatmul.mubr.msk.f32.vlgmr.msra.gmra.mrb[0].mxu1 %vm104_vm0, %v2180_v25  ;;  %v1682_v27 = vpop.f32.mrb[3].mxu0  ;;  %v359_v29 = vrot.slane %v354_v26, 2 }
 0x11d   :  { %1771 = vmatpush3.bf16.msra.mxu1 %v2160_v18  ;;  %1687 = vmatprep.mubr.msk.f32.mxu1 %vm2000_vm1, %v2001_v19 }
 0x11e   :  { %1775 = vmatprep.subr.bf16.mxu1 %v1999_v17 }
 0x1ef   :  { %v1675_v30 = vpop.f32.mrb[0].mxu1 }
 0x1f0   :  { %v2193_v31 = vadd.f32 %v1675_v30, %v1585_v28  ;;  %v269_v32 = vpop.f32.mrb[1].mxu1 }
 0x1f1   :  { %v2195_v33 = vadd.f32 %v1585_v28, %v269_v32 }
 0x1f2   :  { %v361_v34 = vadd.f32 %v359_v29, %v2193_v31 }
 0x1f4   :  { %1816 = vtanh.f32 %v361_v34  ;;  %v1589_v38 = vmul.f32 -1.442695, %v361_v34 }
 0x1f6   :  { %1818 = vpow2.f32 %v1589_v38 }
 0x1fe   :  { %v1817_v36 = vpop.eup %1816 }
 0x1ff   :  { %376 = vrot.lane.b32.xlu0 %v1817_v36, %s2002_s19 }
 0x200   :  { %v1819_v39 = vpop.eup %1818 }
 0x201   :  { %v365_v40 = vadd.f32 1.0, %v1819_v39 }
 0x203   :  { %371 = vrot.lane.b32.xlu0 %v370_v37, %s2003_s5  ;;  %1820 = vrcp.f32 %v365_v40 }
 0x20d   :  { %v1821_v41 = vpop.eup %1820 }
 0x271   :  { %v377_v42 = vpop.permute.xlu0 %376 }
 0x272   :  { %v379_v43 = vmul.f32 %v1821_v41, %v377_v42 }
 0x274   :  { %381 = vrot.lane.b32.xlu1 %v379_v43, %s2003_s5 }
 0x275   :  { %v372_v44 = vpop.permute.xlu0 %371 }
 0x276   :  { %v374_v45 = vmul.f32 %v1821_v41, %v372_v44 }
 0x2e6   :  { %v382_v46 = vpop.permute.xlu1 %381 }
 0x2e7   :  { %v384_v47 = vadd.f32 %v382_v46, %v374_v45 }
 0x2e9   :  { %1822 = vtanh.f32 %v384_v47  ;;  %v503_v0 = vrot.slane %v384_v47, 2 }
 0x2f3   :  { %v1823_v48 = vpop.eup %1822 }
 0x2f4   :  { %387 = vrot.lane.b32.xlu1 %v1823_v48, %s2004_s13 }
 0x366   :  { %v388_v49 = vpop.permute.xlu1 %387 }
 0x367   :  { %v2205_v50 = vmul.f32 %v1821_v41, %v388_v49 }
 0x369   :  { %v416_v51 = vrot.slane %v2205_v50, 6 }
 0x36b   :  { %417 = vrot.lane.b32.xlu0 %v416_v51, %s2005_s20 }
 0x3dd   :  { %v418_v52 = vpop.permute.xlu0 %417 }
 0x3de   :  { %1688 = vmatmul.mubr.msk.f32.vlgmr.msra.gmra.mrb[2].mxu1 %vm284_vm2, %v418_v52 }
 0x3df   :  { %1777 = vmatpush3.bf16.msra.mxu1 %v2160_v18  ;;  %1701 = vmatprep.mubr.msk.f32.mxu1 %vm2000_vm1, %v2001_v19 }
 0x3e0   :  { %1781 = vmatprep.subr.bf16.mxu1 %v1999_v17 }
 0x4b1   :  { %v487_v53 = vpop.f32.mrb[2].mxu1 }
 0x4b2   :  { %v492_v54 = vrot.slane %v487_v53, 4  ;;  %v1689_v55 = vpop.f32.mrb[3].mxu1 }
 0x4b4   :  { %v494_v56 = vadd.f32 %v492_v54, %v2193_v31 }
 0x4b6   :  { %1824 = vtanh.f32 %v494_v56  ;;  %v1593_v58 = vmul.f32 -1.442695, %v494_v56 }
 0x4b8   :  { %1826 = vpow2.f32 %v1593_v58 }
 0x4c0   :  { %v1825_v57 = vpop.eup %1824 }
 0x4c1   :  { %507 = vrot.lane.b32.xlu1 %v1825_v57, %s2002_s19 }
 0x4c2   :  { %v1827_v59 = vpop.eup %1826 }
 0x4c3   :  { %v498_v60 = vadd.f32 1.0, %v1827_v59 }
 0x4c5   :  { %1828 = vrcp.f32 %v498_v60 }
 0x4cf   :  { %v1829_v61 = vpop.eup %1828 }
 0x4d0   :  { %v505_v1 = vmul.f32 %v1829_v61, %v503_v0 }
 0x533   :  { %v508_v62 = vpop.permute.xlu1 %507 }
 0x534   :  { %v510_v63 = vmul.f32 %v1829_v61, %v508_v62 }
 0x536   :  { %512 = vrot.lane.b32.xlu0 %v510_v63, %s2003_s5 }
 0x5a8   :  { %v513_v2 = vpop.permute.xlu0 %512 }
 0x5a9   :  { %v515_v3 = vadd.f32 %v513_v2, %v505_v1 }
 0x5ab   :  { %1830 = vtanh.f32 %v515_v3  ;;  %v620_v23 = vrot.slane %v515_v3, 2 }
 0x5b5   :  { %v1831_v4 = vpop.eup %1830 }
 0x5b6   :  { %518 = vrot.lane.b32.xlu1 %v1831_v4, %s2004_s13 }
 0x628   :  { %v519_v5 = vpop.permute.xlu1 %518 }
 0x629   :  { %v2218_v6 = vmul.f32 %v1829_v61, %v519_v5 }
 0x62b   :  { %v533_v7 = vrot.slane %v2218_v6, 4 }
 0x62d   :  { %534 = vrot.lane.b32.xlu0 %v533_v7, %s2005_s20 }
 0x69f   :  { %v535_v8 = vpop.permute.xlu0 %534 }
 0x6a0   :  { %1695 = vmatmul.mubr.msk.f32.vlgmr.msra.gmra.mrb[4].mxu0 %vm284_vm2, %v535_v8 }
 0x6a1   :  { %1780 = vmatpush3.bf16.msra.mxu0 %v2160_v18  ;;  %1708 = vmatprep.mubr.msk.f32.mxu0 %vm2000_vm1, %v2001_v19 }
 0x6a2   :  { %1784 = vmatprep.subr.bf16.mxu0 %v1999_v17 }
 0x773   :  { %v604_v9 = vpop.f32.mrb[4].mxu0 }
 0x774   :  { %v609_v10 = vrot.slane %v604_v9, 6  ;;  %v1696_v11 = vpop.f32.mrb[5].mxu0 }
 0x776   :  { %v611_v12 = vadd.f32 %v609_v10, %v2193_v31 }
 0x778   :  { %1832 = vtanh.f32 %v611_v12  ;;  %v1595_v14 = vmul.f32 -1.442695, %v611_v12 }
 0x77a   :  { %1834 = vpow2.f32 %v1595_v14 }
 0x782   :  { %v1833_v13 = vpop.eup %1832 }
 0x783   :  { %624 = vrot.lane.b32.xlu1 %v1833_v13, %s2002_s19 }
 0x784   :  { %v1835_v15 = vpop.eup %1834 }
 0x785   :  { %v615_v16 = vadd.f32 1.0, %v1835_v15 }
 0x787   :  { %1836 = vrcp.f32 %v615_v16 }
 0x791   :  { %v1837_v20 = vpop.eup %1836 }
 0x792   :  { %v622_v26 = vmul.f32 %v1837_v20, %v620_v23 }
 0x7f5   :  { %v625_v21 = vpop.permute.xlu1 %624 }
 0x7f6   :  { %v627_v22 = vmul.f32 %v1837_v20, %v625_v21 }
 0x7f8   :  { %629 = vrot.lane.b32.xlu0 %v627_v22, %s2003_s5 }
 0x86a   :  { %v630_v27 = vpop.permute.xlu0 %629 }
 0x86b   :  { %v632_v28 = vadd.f32 %v630_v27, %v622_v26 }
 0x86d   :  { %1838 = vtanh.f32 %v632_v28  ;;  %v734_v46 = vrot.slane %v632_v28, 2 }
 0x877   :  { %v1839_v29 = vpop.eup %1838 }
 0x878   :  { %635 = vrot.lane.b32.xlu1 %v1839_v29, %s2004_s13 }
 0x8ea   :  { %v636_v30 = vpop.permute.xlu1 %635 }
 0x8eb   :  { %v2231_v32 = vmul.f32 %v1837_v20, %v636_v30 }
 0x8ed   :  { %v650_v34 = vrot.slane %v2231_v32, 2 }
 0x8ef   :  { %651 = vrot.lane.b32.xlu0 %v650_v34, %s2005_s20 }
 0x961   :  { %v652_v35 = vpop.permute.xlu0 %651 }
 0x962   :  { %1702 = vmatmul.mubr.msk.f32.vlgmr.msra.gmra.mrb[4].mxu1 %vm284_vm2, %v652_v35 }
 0x963   :  { %1783 = vmatpush3.bf16.msra.mxu1 %v2160_v18  ;;  %1715 = vmatprep.mubr.msk.f32.mxu1 %vm2000_vm1, %v2001_v19 }
 0x964   :  { %1787 = vmatprep.subr.bf16.mxu1 %v1999_v17 }
 0xa35   :  { %v721_v36 = vpop.f32.mrb[4].mxu1 }
 0xa36   :  { %v725_v37 = vadd.f32 %v721_v36, %v2193_v31  ;;  %v1703_v38 = vpop.f32.mrb[5].mxu1 }
 0xa38   :  { %1840 = vtanh.f32 %v725_v37  ;;  %v1597_v40 = vmul.f32 -1.442695, %v725_v37 }
 0xa3a   :  { %1842 = vpow2.f32 %v1597_v40 }
 0xa42   :  { %v1841_v39 = vpop.eup %1840 }
 0xa43   :  { %738 = vrot.lane.b32.xlu1 %v1841_v39, %s2002_s19 }
 0xa44   :  { %v1843_v41 = vpop.eup %1842 }
 0xa45   :  { %v729_v42 = vadd.f32 1.0, %v1843_v41 }
 0xa47   :  { %1844 = vrcp.f32 %v729_v42 }
 0xa51   :  { %v1845_v43 = vpop.eup %1844 }
 0xa52   :  { %v736_v47 = vmul.f32 %v1845_v43, %v734_v46 }
 0xab5   :  { %v739_v44 = vpop.permute.xlu1 %738 }
 0xab6   :  { %v741_v45 = vmul.f32 %v1845_v43, %v739_v44 }
 0xab8   :  { %743 = vrot.lane.b32.xlu0 %v741_v45, %s2003_s5 }
 0xb2a   :  { %v744_v48 = vpop.permute.xlu0 %743 }
 0xb2b   :  { %v746_v49 = vadd.f32 %v744_v48, %v736_v47 }
 0xb2d   :  { %1846 = vtanh.f32 %v746_v49  ;;  %v850_v1 = vrot.slane %v746_v49, 2 }
 0xb37   :  { %v1847_v31 = vpop.eup %1846 }
 0xb38   :  { %749 = vrot.lane.b32.xlu1 %v1847_v31, %s2004_s13 }
 0xbaa   :  { %v750_v51 = vpop.permute.xlu1 %749 }
 0xbab   :  { %v2244_v52 = vmul.f32 %v1845_v43, %v750_v51 }
 0xbad   :  { %764 = vrot.lane.b32.xlu0 %v2244_v52, %s2005_s20 }
 0xc1f   :  { %v765_v53 = vpop.permute.xlu0 %764 }
 0xc20   :  { %1709 = vmatmul.mubr.msk.f32.vlgmr.msra.gmra.mrb[6].mxu0 %vm284_vm2, %v765_v53 }
 0xc21   :  { %1786 = vmatpush3.bf16.msra.mxu0 %v2160_v18  ;;  %1722 = vmatprep.mubr.msk.f32.mxu0 %vm2000_vm1, %v2001_v19 }
 0xc22   :  { %1790 = vmatprep.subr.bf16.mxu0 %v1999_v17 }
 0xcf3   :  { %v834_v54 = vpop.f32.mrb[6].mxu0 }
 0xcf4   :  { %v839_v55 = vrot.slane %v834_v54, 2  ;;  %v1710_v56 = vpop.f32.mrb[7].mxu0 }
 0xcf6   :  { %v841_v57 = vadd.f32 %v839_v55, %v2195_v33 }
 0xcf8   :  { %1848 = vtanh.f32 %v841_v57  ;;  %v1599_v59 = vmul.f32 -1.442695, %v841_v57 }
 0xcfa   :  { %1850 = vpow2.f32 %v1599_v59 }
 0xd02   :  { %v1849_v58 = vpop.eup %1848 }
 0xd03   :  { %854 = vrot.lane.b32.xlu1 %v1849_v58, %s2002_s19 }
 0xd04   :  { %v1851_v60 = vpop.eup %1850 }
 0xd05   :  { %v845_v61 = vadd.f32 1.0, %v1851_v60 }
 0xd07   :  { %1852 = vrcp.f32 %v845_v61 }
 0xd11   :  { %v1853_v62 = vpop.eup %1852 }
 0xd12   :  { %v852_v2 = vmul.f32 %v1853_v62, %v850_v1 }
 0xd75   :  { %v855_v63 = vpop.permute.xlu1 %854 }
 0xd76   :  { %v857_v0 = vmul.f32 %v1853_v62, %v855_v63 }
 0xd78   :  { %859 = vrot.lane.b32.xlu0 %v857_v0, %s2003_s5 }
 0xdea   :  { %v860_v3 = vpop.permute.xlu0 %859 }
 0xdeb   :  { %v862_v4 = vadd.f32 %v860_v3, %v852_v2 }
 0xded   :  { %1854 = vtanh.f32 %v862_v4  ;;  %v966_v26 = vrot.slane %v862_v4, 2 }
 0xdf7   :  { %v1855_v5 = vpop.eup %1854 }
 0xdf8   :  { %865 = vrot.lane.b32.xlu1 %v1855_v5, %s2004_s13 }
 0xe6a   :  { %v866_v7 = vpop.permute.xlu1 %865 }
 0xe6b   :  { %v2257_v8 = vmul.f32 %v1853_v62, %v866_v7 }
 0xe6d   :  { %v879_v9 = vrot.slane %v2257_v8, 6 }
 0xe6f   :  { %880 = vrot.lane.b32.xlu0 %v879_v9, %s2005_s20 }
 0xee1   :  { %v881_v10 = vpop.permute.xlu0 %880 }
 0xee2   :  { %1716 = vmatmul.mubr.msk.f32.vlgmr.msra.gmra.mrb[6].mxu1 %vm284_vm2, %v881_v10 }
 0xee3   :  { %1789 = vmatpush3.bf16.msra.mxu1 %v2160_v18  ;;  %1729 = vmatprep.mubr.msk.f32.mxu1 %vm2000_vm1, %v2001_v19 }
 0xee4   :  { %1793 = vmatprep.subr.bf16.mxu1 %v1999_v17 }
 0xfb5   :  { %v950_v11 = vpop.f32.mrb[6].mxu1 }
 0xfb6   :  { %v955_v12 = vrot.slane %v950_v11, 4  ;;  %v1717_v13 = vpop.f32.mrb[7].mxu1 }
 0xfb7   :  { %v1395_v13 = vld [vmem:[#allocation8] sm:$0xff] }
 0xfb8   :  { %v957_v14 = vadd.f32 %v955_v12, %v2195_v33 }
 0xfba   :  { %1856 = vtanh.f32 %v957_v14  ;;  %v1601_v16 = vmul.f32 -1.442695, %v957_v14  ;;  %v1396_v14 = vld [vmem:[#allocation8 + $0x8] sm:$0xff] }
 0xfbc   :  { %1858 = vpow2.f32 %v1601_v16 }
 0xfc4   :  { %v1857_v15 = vpop.eup %1856 }
 0xfc5   :  { %970 = vrot.lane.b32.xlu1 %v1857_v15, %s2002_s19  ;;  %v1791_v15 = vpack.c.bf16 %v1396_v14, %v1395_v13 }
 0xfc6   :  { %v1859_v20 = vpop.eup %1858 }
 0xfc7   :  { %v961_v21 = vadd.f32 1.0, %v1859_v20 }
 0xfc9   :  { %1860 = vrcp.f32 %v961_v21 }
 0xfd3   :  { %v1861_v18 = vpop.eup %1860 }
 0xfd4   :  { %v968_v27 = vmul.f32 %v1861_v18, %v966_v26 }
0x1037   :  { %v971_v22 = vpop.permute.xlu1 %970 }
0x1038   :  { %v973_v23 = vmul.f32 %v1861_v18, %v971_v22 }
0x103a   :  { %975 = vrot.lane.b32.xlu0 %v973_v23, %s2003_s5 }
0x10ac   :  { %v976_v28 = vpop.permute.xlu0 %975 }
0x10ad   :  { %v978_v29 = vadd.f32 %v976_v28, %v968_v27 }
0x10af   :  { %1862 = vtanh.f32 %v978_v29  ;;  %v1082_v49 = vrot.slane %v978_v29, 2 }
0x10b9   :  { %v1863_v30 = vpop.eup %1862 }
0x10ba   :  { %981 = vrot.lane.b32.xlu1 %v1863_v30, %s2004_s13 }
0x112c   :  { %v982_v34 = vpop.permute.xlu1 %981 }
0x112d   :  { %v2270_v35 = vmul.f32 %v1861_v18, %v982_v34 }
0x112f   :  { %v995_v36 = vrot.slane %v2270_v35, 4 }
0x1131   :  { %996 = vrot.lane.b32.xlu0 %v995_v36, %s2005_s20 }
0x11a3   :  { %v997_v37 = vpop.permute.xlu0 %996 }
0x11a4   :  { %1723 = vmatmul.mubr.msk.f32.vlgmr.msra.gmra.mrb[8].mxu0 %vm284_vm2, %v997_v37 }
0x11a5   :  { %1736 = vmatprep.mubr.msk.f32.mxu0 %vm2000_vm1, %v2001_v19  ;;  %1792 = vmatpush3.bf16.msra.mxu0 %v1791_v15 }
0x1277   :  { %v1066_v38 = vpop.f32.mrb[8].mxu0 }
0x1278   :  { %v1071_v39 = vrot.slane %v1066_v38, 6  ;;  %v1724_v40 = vpop.f32.mrb[9].mxu0 }
0x127a   :  { %v1073_v41 = vadd.f32 %v1071_v39, %v2195_v33 }
0x127c   :  { %1864 = vtanh.f32 %v1073_v41  ;;  %v1603_v43 = vmul.f32 -1.442695, %v1073_v41 }
0x127e   :  { %1866 = vpow2.f32 %v1603_v43 }
0x1286   :  { %v1865_v42 = vpop.eup %1864 }
0x1287   :  { %1086 = vrot.lane.b32.xlu1 %v1865_v42, %s2002_s19 }
0x1288   :  { %v1867_v44 = vpop.eup %1866 }
0x1289   :  { %v1077_v45 = vadd.f32 1.0, %v1867_v44  ;;  %v2007_v44 = vmov 0  }
0x128a   :  { %1815 = vset.pattern.permute.xlu1 %v2007_v44  ;;  %1814 = vset.pattern.permute.xlu0 %v2007_v44 }
0x128b   :  { %1868 = vrcp.f32 %v1077_v45 }
0x1295   :  { %v1869_v46 = vpop.eup %1868 }
0x1296   :  { %v1084_v31 = vmul.f32 %v1869_v46, %v1082_v49 }
0x12f9   :  { %v1087_v47 = vpop.permute.xlu1 %1086 }
0x12fa   :  { %v1089_v48 = vmul.f32 %v1869_v46, %v1087_v47 }
0x12fc   :  { %1091 = vrot.lane.b32.xlu0 %v1089_v48, %s2003_s5 }
0x136e   :  { %v1092_v51 = vpop.permute.xlu0 %1091 }
0x136f   :  { %v1094_v53 = vadd.f32 %v1092_v51, %v1084_v31 }
0x1371   :  { %1870 = vtanh.f32 %v1094_v53 }
0x137b   :  { %v1871_v54 = vpop.eup %1870 }
0x137c   :  { %1097 = vrot.lane.b32.xlu1 %v1871_v54, %s2004_s13 }
0x13ee   :  { %v1098_v55 = vpop.permute.xlu1 %1097 }
0x13ef   :  { %v1100_v56 = vmul.f32 %v1869_v46, %v1098_v55  ;;  %v1591_v46 = vld [vmem:[#allocation2] ss:$0 sm:$0xff] }
0x13f1   :  { %v1111_v57 = vrot.slane %v1100_v56, 2 }
0x13f3   :  { %1112 = vrot.lane.b32.xlu0 %v1111_v57, %s2005_s20 }
0x1465   :  { %v1113_v58 = vpop.permute.xlu0 %1112 }
0x1466   :  { %1730 = vmatmul.mubr.msk.f32.vlgmr.msra.gmra.mrb[8].mxu1 %vm284_vm2, %v1113_v58 }
0x1467   :  { %1747 = vmatprep.mubr.msk.f32.mxu1 %vm2000_vm1, %v2001_v19  ;;  %v1590_v19 = vld [vmem:[%s2361_s6] ss:$0 sm:$0xff] }
0x1539   :  { %v1182_v59 = vpop.f32.mrb[8].mxu1 }
0x153a   :  { %v1186_v60 = vadd.f32 %v1182_v59, %v2195_v33  ;;  %v1731_v61 = vpop.f32.mrb[9].mxu1  ;;  %v1195_v33 = vrot.slane %v1094_v53, 2 }
0x153c   :  { %1872 = vtanh.f32 %v1186_v60  ;;  %v1605_v63 = vmul.f32 -1.442695, %v1186_v60 }
0x153e   :  { %1874 = vpow2.f32 %v1605_v63 }
0x1546   :  { %v1873_v62 = vpop.eup %1872 }
0x1547   :  { %1199 = vrot.lane.b32.xlu1 %v1873_v62, %s2002_s19 }
0x1548   :  { %v1875_v0 = vpop.eup %1874 }
0x1549   :  { %v1190_v1 = vadd.f32 1.0, %v1875_v0 }
0x154b   :  { %1876 = vrcp.f32 %v1190_v1 }
0x1555   :  { %v1877_v2 = vpop.eup %1876 }
0x1556   :  { %v1197_v5 = vmul.f32 %v1877_v2, %v1195_v33 }
0x15b9   :  { %v1200_v3 = vpop.permute.xlu1 %1199 }
0x15ba   :  { %v1202_v4 = vmul.f32 %v1877_v2, %v1200_v3 }
0x15bc   :  { %1204 = vrot.lane.b32.xlu0 %v1202_v4, %s2003_s5 }
0x15c0   :  { %396 = vrot.lane.b32.xlu0 %v1590_v19, %s2006_s21 }
0x162e   :  { %v1205_v7 = vpop.permute.xlu0 %1204 }
0x162f   :  { %v1207_v9 = vadd.f32 %v1205_v7, %v1197_v5 }
0x1631   :  { %1878 = vtanh.f32 %v1207_v9 }
0x1632   :  { %v397_v10 = vpop.permute.xlu0 %396 }
0x1633   :  { %v1101_v11 = vmul.f32 %v1100_v56, %v397_v10  ;;  %v985_v18 = vmul.f32 %v2270_v35, %v397_v10  ;;  %v639_v22 = vmul.f32 %v2231_v32, %v397_v10  ;;  %v869_v23 = vmul.f32 %v2257_v8, %v397_v10 }
0x1634   :  { %v522_v26 = vmul.f32 %v2218_v6, %v397_v10  ;;  %v753_v27 = vmul.f32 %v2244_v52, %v397_v10  ;;  %v399_v28 = vmul.f32 %v397_v10, %v2205_v50 }
0x1635   :  { %1103 = vrot.lane.b32.xlu0 %v1101_v11, %s2005_s20 }
0x163b   :  { %v1879_v12 = vpop.eup %1878 }
0x163c   :  { %1210 = vrot.lane.b32.xlu1 %v1879_v12, %s2004_s13 }
0x16a7   :  { %v1104_v29 = vpop.permute.xlu0 %1103 }
0x16a8   :  { %v1106_v32 = vsel %vm644_vm3, %v1104_v29, 0.0 }
0x16ae   :  { %v1211_v16 = vpop.permute.xlu1 %1210 }
0x16af   :  { %v1213_v20 = vmul.f32 %v1877_v2, %v1211_v16 }
0x16b1   :  { %v1214_v21 = vmul.f32 %v1213_v20, %v397_v10  ;;  %1405 = vrot.lane.b32.xlu1 %v1213_v20, %s2005_s20 }
0x16b3   :  { %1216 = vrot.lane.b32.xlu0 %v1214_v21, %s2005_s20 }
0x16b5   :  { %987 = vrot.lane.b32.xlu1 %v985_v18, %s2005_s20 }
0x16b7   :  { %641 = vrot.lane.b32.xlu0 %v639_v22, %s2005_s20 }
0x16b9   :  { %871 = vrot.lane.b32.xlu1 %v869_v23, %s2005_s20 }
0x16bb   :  { %524 = vrot.lane.b32.xlu0 %v522_v26, %s2005_s20 }
0x16bd   :  { %755 = vrot.lane.b32.xlu1 %v753_v27, %s2005_s20 }
0x16c1   :  { %401 = vrot.lane.b32.xlu1 %v399_v28, %s2005_s20 }
0x16da   :  { %1107 = vadd.xlane.f32.xlu0 %v1106_v32 }
0x1723   :  { %v1406_v8 = vpop.permute.xlu1 %1405 }
0x1724   :  { %1737 = vmatmul.mubr.msk.f32.vlgmr.msra.gmra.mrb[10].mxu0 %vm284_vm2, %v1406_v8 }
0x1725   :  { %v1217_v6 = vpop.permute.xlu0 %1216 }
0x1726   :  { %v1219_v30 = vsel %vm758_vm4, %v1217_v6, 0.0 }
0x1727   :  { %v988_v52 = vpop.permute.xlu1 %987  ;;  %1220 = vadd.xlane.f32.xlu0 %v1219_v30 }
0x1728   :  { %v990_v34 = vsel %vm527_vm5, %v988_v52, 0.0 }
0x1729   :  { %991 = vadd.xlane.f32.xlu1 %v990_v34  ;;  %v642_v50 = vpop.permute.xlu0 %641 }
0x172a   :  { %v645_v37 = vsel %vm644_vm3, %v642_v50, 0.0 }
0x172b   :  { %v872_v35 = vpop.permute.xlu1 %871 }
0x172c   :  { %v874_v36 = vsel %vm404_vm6, %v872_v35, 0.0 }
0x172d   :  { %875 = vadd.xlane.f32.xlu0 %v874_v36  ;;  %646 = vadd.xlane.f32.xlu1 %v645_v37  ;;  %v525_v38 = vpop.permute.xlu0 %524 }
0x172e   :  { %v528_v41 = vsel %vm527_vm5, %v525_v38, 0.0 }
0x172f   :  { %v756_v39 = vpop.permute.xlu1 %755 }
0x1730   :  { %v759_v40 = vsel %vm758_vm4, %v756_v39, 0.0 }
0x1731   :  { %760 = vadd.xlane.f32.xlu0 %v759_v40  ;;  %529 = vadd.xlane.f32.xlu1 %v528_v41 }
0x1733   :  { %v402_v42 = vpop.permute.xlu1 %401 }
0x1734   :  { %v405_v43 = vsel %vm404_vm6, %v402_v42, 0.0 }
0x1735   :  { %406 = vadd.xlane.f32.xlu0 %v405_v43 }
0x1767   :  { %v1108_v45 = vpop.xlane.xlu0 %1107 }
0x1768   :  { %v1109_v48 = vadd.f32 %v1591_v46, %v1108_v45 }
0x176a   :  { %v1224_v53 = vrot.slane %v1109_v48, 2 }
0x17b4   :  { %v1221_v47 = vpop.xlane.xlu0 %1220 }
0x17b5   :  { %v1222_v31 = vadd.f32 %v1591_v46, %v1221_v47 }
0x17b6   :  { %v992_v49 = vpop.xlane.xlu1 %991 }
0x17b7   :  { %v993_v51 = vadd.f32 %v1591_v46, %v992_v49  ;;  %v1226_v57 = vmax.f32 %v1222_v31, %v1224_v53 }
0x17b9   :  { %v1228_v54 = vrot.slane %v993_v51, 4 }
0x17ba   :  { %v647_v55 = vpop.xlane.xlu1 %646  ;;  %v876_v56 = vpop.xlane.xlu0 %875 }
0x17bb   :  { %v877_v58 = vadd.f32 %v1591_v46, %v876_v56  ;;  %v1230_v59 = vmax.f32 %v1226_v57, %v1228_v54  ;;  %v648_v60 = vadd.f32 %v1591_v46, %v647_v55 }
0x17bd   :  { %v1232_v61 = vrot.slane %v877_v58, 6  ;;  %v1237_v3 = vrot.slane %v648_v60, 2 }
0x17be   :  { %v530_v62 = vpop.xlane.xlu1 %529  ;;  %v761_v63 = vpop.xlane.xlu0 %760 }
0x17bf   :  { %v531_v0 = vadd.f32 %v1591_v46, %v530_v62  ;;  %v1234_v1 = vmax.f32 %v1230_v59, %v1232_v61  ;;  %v762_v2 = vadd.f32 %v1591_v46, %v761_v63 }
0x17c1   :  { %v1235_v4 = vmax.f32 %v1234_v1, %v762_v2  ;;  %v1241_v33 = vrot.slane %v531_v0, 4 }
0x17c2   :  { %v407_v19 = vpop.xlane.xlu0 %406 }
0x17c3   :  { %v1239_v5 = vmax.f32 %v1235_v4, %v1237_v3  ;;  %v414_v7 = vadd.f32 %v1591_v46, %v407_v19  ;;  %v1481_v19 = vld [vmem:[%s2365_s10] sm:$0xff] }
0x17c5   :  { %v1243_v9 = vmax.f32 %v1239_v5, %v1241_v33  ;;  %v1245_v10 = vrot.slane %v414_v7, 6  ;;  %v1482_v33 = vld [vmem:[%s2365_s10 + $0x8] sm:$0xff] }
0x17c6   :  { %v1794_v5 = vpack.c.bf16 %v1482_v33, %v1481_v19 }
0x17c7   :  { %v1247_v11 = vmax.f32 %v1243_v9, %v1245_v10  ;;  %v1484_v9 = vld [vmem:[%s2365_s10 + $0x18] sm:$0xff] }
0x17c8   :  { %1795 = vmatpush3.bf16.msra.mxu1 %v1794_v5 }
0x17c9   :  { %v1248_v12 = vsub.f32 %v1222_v31, %v1247_v11  ;;  %v1252_v13 = vrot.slane %v1247_v11, 6  ;;  %v1257_v14 = vrot.slane %v1247_v11, 4  ;;  %v1262_v15 = vrot.slane %v1247_v11, 2  ;;  %1796 = vmatprep.subr.bf16.mxu1 %v1999_v17 }
0x17ca   :  { %v1267_v28 = vsub.f32 %v762_v2, %v1247_v11 }
0x17cb   :  { %v1249_v16 = vmul.f32 1.442695, %v1248_v12  ;;  %v1254_v20 = vsub.f32 %v1109_v48, %v1252_v13  ;;  %v1259_v21 = vsub.f32 %v993_v51, %v1257_v14  ;;  %v1264_v18 = vsub.f32 %v877_v58, %v1262_v15 }
0x17cc   :  { %v1270_v27 = vsub.f32 %v648_v60, %v1252_v13  ;;  %v1273_v29 = vsub.f32 %v531_v0, %v1257_v14  ;;  %v1276_v8 = vsub.f32 %v414_v7, %v1262_v15  ;;  %v1268_v6 = vmul.f32 1.442695, %v1267_v28  ;;  %v1483_v7 = vld [vmem:[%s2365_s10 + $0x10] sm:$0xff] }
0x17cd   :  { %v1255_v22 = vmul.f32 1.442695, %v1254_v20  ;;  %v1260_v23 = vmul.f32 1.442695, %v1259_v21  ;;  %v1265_v26 = vmul.f32 1.442695, %v1264_v18  ;;  %1880 = vpow2.f32 %v1249_v16 }
0x17ce   :  { %v1271_v32 = vmul.f32 1.442695, %v1270_v27  ;;  %v1274_v30 = vmul.f32 1.442695, %v1273_v29  ;;  %v1277_v52 = vmul.f32 1.442695, %v1276_v8  ;;  %v1797_v10 = vpack.c.bf16 %v1484_v9, %v1483_v7 }
0x17cf   :  { %1882 = vpow2.f32 %v1255_v22 }
0x17d0   :  { %1884 = vpow2.f32 %v1260_v23  ;;  %1798 = vmatpush3.bf16.msra.mxu1 %v1797_v10  ;;  %v1606_v23 = vld [vmem:[%s2364_s9] ss:$0 sm:$0xff] }
0x17d1   :  { %1886 = vpow2.f32 %v1265_v26 }
0x17d2   :  { %1888 = vpow2.f32 %v1271_v32 }
0x17d3   :  { %1890 = vpow2.f32 %v1268_v6 }
0x17d4   :  { %1892 = vpow2.f32 %v1274_v30 }
0x17d5   :  { %1894 = vpow2.f32 %v1277_v52 }
0x17d7   :  { %v1881_v34 = vpop.eup %1880 }
0x17d9   :  { %v1883_v50 = vpop.eup %1882 }
0x17da   :  { %v1885_v35 = vpop.eup %1884  ;;  %v1280_v36 = vrot.slane %v1883_v50, 2 }
0x17db   :  { %v1887_v37 = vpop.eup %1886  ;;  %v1284_v39 = vrot.slane %v1885_v35, 4 }
0x17dc   :  { %v1282_v38 = vadd.f32 %v1881_v34, %v1280_v36  ;;  %v1288_v41 = vrot.slane %v1887_v37, 6  ;;  %v1889_v42 = vpop.eup %1888 }
0x17dd   :  { %v1891_v43 = vpop.eup %1890  ;;  %v1293_v47 = vrot.slane %v1889_v42, 2 }
0x17de   :  { %v1286_v40 = vadd.f32 %v1284_v39, %v1282_v38  ;;  %v1893_v45 = vpop.eup %1892 }
0x17df   :  { %v1895_v48 = vpop.eup %1894  ;;  %v1297_v49 = vrot.slane %v1893_v45, 4 }
0x17e0   :  { %v1290_v44 = vadd.f32 %v1288_v41, %v1286_v40  ;;  %v1301_v51 = vrot.slane %v1895_v48, 6 }
0x17e2   :  { %v1291_v46 = vadd.f32 %v1891_v43, %v1290_v44  ;;  %v1608_v44 = vld [vmem:[%s2366_s11] ss:$0 sm:$0xff] }
0x17e4   :  { %v1295_v31 = vadd.f32 %v1293_v47, %v1291_v46 }
0x17e6   :  { %v1299_v53 = vadd.f32 %v1297_v49, %v1295_v31 }
0x17e8   :  { %v1303_v54 = vadd.f32 %v1301_v51, %v1299_v53 }
0x17ea   :  { %1896 = vrcp.f32 %v1303_v54 }
0x17f4   :  { %v1897_v55 = vpop.eup %1896 }
0x17f5   :  { %v1354_v56 = vmul.f32 %v1897_v55, %v1891_v43  ;;  %v1306_v57 = vmul.f32 %v1897_v55, %v1881_v34  ;;  %v1315_v58 = vrot.slane %v1897_v55, 6  ;;  %v1328_v62 = vrot.slane %v1897_v55, 4 }
0x17f6   :  { %v1341_v0 = vrot.slane %v1897_v55, 2 }
0x17f7   :  { %v1475_v59 = vpop.f32.mrb[10].mxu0  ;;  %1357 = vperm.xlu1 %1815, %v1354_v56   ;;  %1309 = vperm.xlu0 %1814, %v1306_v57   ;;  %v1317_v61 = vmul.f32 %v1883_v50, %v1315_v58  ;;  %v1330_v63 = vmul.f32 %v1885_v35, %v1328_v62  ;;  %v1362_v2 = vmul.f32 %v1889_v42, %v1315_v58 }
0x17f8   :  { %v1738_v60 = vpop.f32.mrb[11].mxu0  ;;  %v1343_v1 = vmul.f32 %v1887_v37, %v1341_v0  ;;  %v1373_v3 = vmul.f32 %v1893_v45, %v1328_v62  ;;  %v1384_v4 = vmul.f32 %v1895_v48, %v1341_v0  ;;  %v1476_v29 = vadd.f32 %v1606_v23, %v1475_v59 }
0x17fa   :  { %1898 = vtanh.f32 %v1476_v29 }
0x17fb   :  { %1320 = vperm.xlu1 %1815, %v1317_v61  }
0x17ff   :  { %1333 = vperm.xlu1 %1815, %v1330_v63  }
0x1803   :  { %1346 = vperm.xlu1 %1815, %v1343_v1  }
0x1804   :  { %v1899_v42 = vpop.eup %1898 }
0x1807   :  { %1365 = vperm.xlu1 %1815, %v1362_v2  }
0x180b   :  { %1376 = vperm.xlu1 %1815, %v1373_v3  }
0x180f   :  { %1387 = vperm.xlu1 %1815, %v1384_v4  }
0x1876   :  { %v1358_v11 = vpop.permute.xlu1 %1357  ;;  %v1310_v14 = vpop.permute.xlu0 %1309 }
0x1877   :  { %v1312_v21 = vmul.f32 %v1310_v14, %v2178_v24  ;;  %v1360_v30 = vmul.f32 %v1358_v11, %v2180_v25 }
0x187a   :  { %v1321_v12 = vpop.permute.xlu1 %1320 }
0x187b   :  { %v1323_v13 = vmul.f32 %v1321_v12, %v2178_v24 }
0x187d   :  { %v1325_v16 = vrot.slane %v1323_v13, 2 }
0x187e   :  { %v1334_v15 = vpop.permute.xlu1 %1333 }
0x187f   :  { %v1336_v20 = vmul.f32 %v1334_v15, %v2178_v24  ;;  %v1327_v17 = vadd.f32 %v1325_v16, %v1312_v21 }
0x1881   :  { %v1338_v18 = vrot.slane %v1336_v20, 4 }
0x1882   :  { %v1347_v22 = vpop.permute.xlu1 %1346 }
0x1883   :  { %v1349_v26 = vmul.f32 %v1347_v22, %v2178_v24  ;;  %v1340_v27 = vadd.f32 %v1338_v18, %v1327_v17 }
0x1885   :  { %v1351_v28 = vrot.slane %v1349_v26, 6 }
0x1886   :  { %v1366_v32 = vpop.permute.xlu1 %1365 }
0x1887   :  { %v1353_v8 = vadd.f32 %v1351_v28, %v1340_v27  ;;  %v1368_v6 = vmul.f32 %v1366_v32, %v2180_v25 }
0x1889   :  { %v1361_v34 = vadd.f32 %v1360_v30, %v1353_v8  ;;  %v1370_v50 = vrot.slane %v1368_v6, 2 }
0x188a   :  { %v1377_v52 = vpop.permute.xlu1 %1376 }
0x188b   :  { %v1379_v35 = vmul.f32 %v1377_v52, %v2180_v25  ;;  %v1372_v38 = vadd.f32 %v1370_v50, %v1361_v34 }
0x188d   :  { %v1381_v36 = vrot.slane %v1379_v35, 4 }
0x188e   :  { %v1388_v37 = vpop.permute.xlu1 %1387 }
0x188f   :  { %v1390_v24 = vmul.f32 %v1388_v37, %v2180_v25  ;;  %v1383_v39 = vadd.f32 %v1381_v36, %v1372_v38 }
0x1891   :  { %v1392_v40 = vrot.slane %v1390_v24, 6 }
0x1893   :  { %v1394_v41 = vadd.f32 %v1392_v40, %v1383_v39 }
0x1895   :  { %v1480_v43 = vmul.f32 %v1899_v42, %v1394_v41 }
0x1897   :  { %1748 = vmatmul.mubr.msk.f32.vlgmr.msra.gmra.mrb[10].mxu1 %vm104_vm0, %v1480_v43 }
0x196a   :  { %v1561_v45 = vpop.f32.mrb[10].mxu1 }
0x196b   :  { %v1562_v46 = vadd.f32 %v1608_v44, %v1561_v45  ;;  %v1749_v47 = vpop.f32.mrb[11].mxu1 }
0x196d   :  { %1565 = vst.msk [vmem:[#allocation9] sm:$0x3] %vm758_vm4, %v1562_v46 }
0x196e   :  { %1977 = shalt.err (!%p1974_p0)
}
0x196f   :  { %s1978_s30 = scalar_lea.hbm %s2369_s14, 32 }
0x1970   :  { %p1979_p1 = scmp.ne.s32.totalorder %s2369_s14, %s1978_s30  ;;  %p1982_p2 = scmp.lt.u32.totalorder %s1978_s30, %s2369_s14 }
0x1972   :  { %p1984_p3 = pnand %p1982_p2, %p1979_p1 }
0x1974   :  { %1987 = shalt.err (!%p1984_p3)
}
0x1975   :  { %1575 = dma.vmem_to_hbm [thread:$0]  %s1573_s28, 32, %s2369_s14, [#allocation5]  }
0x1976   :  { %1992 = dma.done.wait [#allocation5], 32  }
0x1977   :  { %1993 = vsyncadd [#allocation5], 4294967264 }
0x1978   :  { %1579 = vsyncpa [#allocation4], 1 }
0x1979   :  { %1580 = vsyncpa [#allocation7], 1 }
0x197a   :  { %1581 = vsyncpa [#allocation5], 1 }

</bundles_post_ra>
